<compile_context>
chip_gen: v7x
topology: tpu7x:2x2x1
jax: 0.10.0
libtpu: 0.0.40
codegen_flags: <defaults>
</compile_context>

<pallas_src>
import jax
import jax.numpy as jnp
from jax.experimental import pallas as pl
from jax.experimental.pallas import tpu as pltpu

SEG = 128                                   # lane pitch: column segments / GRU gates
_HIGH = jax.lax.Precision.HIGHEST


def _log_softmax(x):
    m = jnp.max(x, axis=-1, keepdims=True)
    s = x - m
    return s - jnp.log(jnp.sum(jnp.exp(s), axis=-1, keepdims=True))


# ------------------------ fused forward builder ----------------------------- #

def make_combined(*, vocab, emb_size, length, jump, hdim1, hdim2, hdim):
    assert length % jump == 0
    V, E, L, H1 = vocab, emb_size, length, hdim1
    assert V <= SEG
    n_keep = L // jump
    flatten_size = H1 * n_keep
    flat2_size = flatten_size + E * L
    gp = -(-H1 // SEG) * SEG                # per-gate lane pitch (128-aligned)
    K_big = L * V + flatten_size            # xfeat = [one_hot(inp) | flat]

    BIAS_ROWS = ("b11", "b2a", "bfused", "b_bslin1", "b_bsflin1",
                 "b12a", "b12b", "b13a", "b13b", "b2b", "b_bsflin2",
                 "gate_g", "gate_1mg")
    ROW = {name: i for i, name in enumerate(BIAS_ROWS)}

    # ------------------------------ kernel --------------------------------- #
    def kernel(inp_ref, w_gru_ref, w_big_ref, w_hid_ref, b_all_ref, out_ref):
        f32 = jnp.float32
        BB = inp_ref.shape[0]

        b_all = b_all_ref[...]                              # [n_bias, SEG]

        def brow(name):
            i = ROW[name]
            return b_all[i:i + 1, :]                        # [1, SEG]

        # ---- in-kernel "embedding gather": one-hot rows of the tokens ----- #
        inp_i = inp_ref[...]                                # [BB, L] int32
        iota_v = jax.lax.broadcasted_iota(jnp.int32, (BB, V), 1)
        oh = [jnp.where(inp_i[:, t:t + 1] == iota_v, 1.0, 0.0).astype(f32)
              for t in range(L)]                            # L x [BB, V]

        # ---- GRU (nn.GRU, 1 layer, gate order r,z,n), gates padded to gp -- #
        w_gru = w_gru_ref[...]                              # [V+H1+1, 3*gp]
        wih_e = w_gru[0:V, :]            # bs_emb @ W_ih^T + b_ih (pack-folded)
        whh = w_gru[V:V + H1, :]
        bhh = w_gru[V + H1:V + H1 + 1, :]

        # Fully unrolled; h carried in vregs.  If L / n_keep grow beyond toy
        # sizes, switch to lax.fori_loop with a [n_keep, BB, H1] VMEM scratch
        # to bound live ranges (64-vreg spill guard).
        h = jnp.zeros((BB, H1), f32)
        kept = [None] * n_keep
        for t in range(L):
            gi = jnp.dot(oh[t], wih_e, preferred_element_type=f32)   # [BB,3gp]
            gh = jnp.dot(h, whh, preferred_element_type=f32) + bhh
            r = jax.nn.sigmoid(gi[:, 0:gp] + gh[:, 0:gp])            # aligned
            z = jax.nn.sigmoid(gi[:, gp:2 * gp] + gh[:, gp:2 * gp])
            n = jnp.tanh(gi[:, 2 * gp:3 * gp] + r * gh[:, 2 * gp:3 * gp])
            h = (1.0 - z[:, :H1]) * n[:, :H1] + z[:, :H1] * h
            rev = L - 1 - t            # torch.flip(output,[1])[:, ::jump, :]
            if rev % jump == 0 and rev // jump < n_keep:
                kept[rev // jump] = h
        flat = jnp.concatenate(kept, axis=1)                # [BB, flatten_size]

        # ---- one shared projection feeds every flat / flat2 consumer ------ #
        xfeat = jnp.concatenate([jnp.concatenate(oh, axis=1), flat], axis=1)
        y2 = jnp.dot(xfeat, w_big_ref[...], preferred_element_type=f32)

        d = jax.nn.relu(y2[:, 0 * SEG:1 * SEG] + brow("b11"))         # layer11
        e = jax.nn.relu(y2[:, 1 * SEG:2 * SEG] + brow("b2a"))         # layer2[:2]
        pred = y2[:, 2 * SEG:3 * SEG] + brow("bfused")                # ll1@final
        xbs = jax.nn.relu(y2[:, 3 * SEG:4 * SEG] + brow("b_bslin1"))  # bslin1
        new_logits = y2[:, 4 * SEG:5 * SEG] + brow("b_bsflin1")       # bsflin1

        w_hid = w_hid_ref[...]                              # [hdim, 8*SEG]

        def hlin(i, v, bname=None):
            y = jnp.dot(v[:, :hdim], w_hid[:, i * SEG:(i + 1) * SEG],
                        preferred_element_type=f32)
            return y if bname is None else y + brow(bname)

        # layer12 / layer13 (ReLU, Linear, ReLU, Linear, + residual)
        xres = d
        d = hlin(1, jax.nn.relu(hlin(0, jax.nn.relu(d), "b12a")), "b12b") + xres
        xres = d
        d = hlin(3, jax.nn.relu(hlin(2, jax.nn.relu(d), "b13a")), "b13b") + xres
        # layer2 tail
        e = jax.nn.relu(hlin(4, e, "b2b"))

        # pred = final(cat(ll1(flat2), ll2(d), ll3(e))), ll_k@final pre-folded
        pred = pred + hlin(5, d) + hlin(6, e)
        # new_logits = bsflin1(flat) + bsflin2(bslin1(flat))
        new_logits = new_logits + hlin(7, xbs) + brow("b_bsflin2")

        pv = pred[:, :V]
        nv = new_logits[:, :V]
        final = brow("gate_g")[:, :V] * pv + brow("gate_1mg")[:, :V] * nv
        out_ref[...] = jnp.concatenate(
            [_log_softmax(final), _log_softmax(pv)], axis=1)

    # ------------------------------ packing -------------------------------- #
    def pack_params(p):
        f32 = jnp.float32

        def hp(a, b):
            return jnp.dot(a, b, precision=_HIGH)

        emb_bs = p["bs_emb"].astype(f32)                    # [V, E]
        emb2 = p["emb"].astype(f32)                         # [V, E]

        # GRU: fold embedding + b_ih into the input projection; pad gates.
        wih_e = hp(emb_bs, p["gru_wih_t"]) + p["gru_bih"]   # [V, 3*H1]

        def pad_gates(w):                                   # [..., 3H1]->[...,3gp]
            out = jnp.zeros(w.shape[:-1] + (3 * gp,), f32)
            for g in range(3):
                out = out.at[..., g * gp:g * gp + H1].set(
                    w[..., g * H1:(g + 1) * H1])
            return out

        w_gru = jnp.concatenate([pad_gates(wih_e),
                                 pad_gates(p["gru_whh_t"]),
                                 pad_gates(p["gru_bhh"])], axis=0)

        # last_lin{1,2,3} @ final constant-folded (f32, HIGHEST precision).
        wfu1 = hp(p["wl1"], p["wf1"])
        wfu2 = hp(p["wl2"], p["wf2"])
        wfu3 = hp(p["wl3"], p["wf3"])
        bfused = (hp(p["bl1"], p["wf1"]) + hp(p["bl2"], p["wf2"])
                  + hp(p["bl3"], p["wf3"]) + p["bf"])

        # Shared projection over xfeat = [one_hot(inp) (L*V) | flat].
        def fold_flat2(w):          # w: [flat2_size, n], rows = [emb2 | flat]
            blocks = [hp(emb2, w[l * E:(l + 1) * E, :]) for l in range(L)]
            return jnp.concatenate(blocks + [w[E * L:, :]], axis=0)

        def flat_only(w):           # w: [flatten_size, n]
            return jnp.concatenate(
                [jnp.zeros((L * V, w.shape[1]), f32), w], axis=0)

        def pad_cols(w):
            return jnp.pad(w, ((0, 0), (0, SEG - w.shape[1])))

        def pad_rows(w, nrows):
            return jnp.pad(w, ((0, nrows - w.shape[0]), (0, 0)))

        w_big = jnp.concatenate([
            pad_cols(fold_flat2(p["w11"])),          # seg 0: layer11
            pad_cols(fold_flat2(p["w2a"])),          # seg 1: layer2[0]
            pad_cols(fold_flat2(wfu1)),              # seg 2: last_lin1@final
            pad_cols(flat_only(p["w_bslin1"])),      # seg 3: bslin1
            pad_cols(flat_only(p["w_bsflin1"])),     # seg 4: bsflin1
        ], axis=1)
        assert w_big.shape == (K_big, 5 * SEG)

        w_hid = jnp.concatenate([
            pad_cols(p["w12a"]), pad_cols(p["w12b"]),
            pad_cols(p["w13a"]), pad_cols(p["w13b"]),
            pad_cols(p["w2b"]),
            pad_cols(wfu2), pad_cols(wfu3),
            pad_cols(pad_rows(p["w_bsflin2"], hdim)),
        ], axis=1)
        assert w_hid.shape == (hdim, 8 * SEG)

        g = jax.nn.sigmoid(p["gate_w"][0, 0])        # folded at pack time

        def brow_pad(v):
            return jnp.pad(v.astype(f32), ((0, 0), (0, SEG - v.shape[1])))

        rows = {
            "b11": brow_pad(p["b11"]), "b2a": brow_pad(p["b2a"]),
            "bfused": brow_pad(bfused),
            "b_bslin1": brow_pad(p["b_bslin1"]),
            "b_bsflin1": brow_pad(p["b_bsflin1"]),
            "b12a": brow_pad(p["b12a"]), "b12b": brow_pad(p["b12b"]),
            "b13a": brow_pad(p["b13a"]), "b13b": brow_pad(p["b13b"]),
            "b2b": brow_pad(p["b2b"]), "b_bsflin2": brow_pad(p["b_bsflin2"]),
            "gate_g": jnp.full((1, SEG), g, f32),
            "gate_1mg": jnp.full((1, SEG), 1.0 - g, f32),
        }
        b_all = jnp.concatenate([rows[name] for name in BIAS_ROWS], axis=0)

        return {"w_gru": w_gru.astype(f32), "w_big": w_big.astype(f32),
                "w_hid": w_hid.astype(f32), "b_all": b_all.astype(f32)}

    # ------------------------------ forward -------------------------------- #
    @jax.jit
    def forward(packed, inp):
        B = inp.shape[0]
        # Pad batch to a sublane multiple and block it over a "parallel" grid
        # axis (uses both v7x TensorCores at realistic batch; harmless here).
        BB = 256 if B >= 256 else max(8, -(-B // 8) * 8)
        Bp = -(-B // BB) * BB
        inp_p = jnp.pad(inp.astype(jnp.int32), ((0, Bp - B), (0, 0)))

        def full(a):
            return pl.BlockSpec(a.shape, lambda i: (0, 0))

        out = pl.pallas_call(
            kernel,
            out_shape=jax.ShapeDtypeStruct((Bp, 2 * V), jnp.float32),
            grid=(Bp // BB,),
            in_specs=[
                pl.BlockSpec((BB, L), lambda i: (i, 0)),
                full(packed["w_gru"]), full(packed["w_big"]),
                full(packed["w_hid"]), full(packed["b_all"]),
            ],
            out_specs=pl.BlockSpec((BB, 2 * V), lambda i: (i, 0)),
            compiler_params=pltpu.CompilerParams(
                dimension_semantics=("parallel",)),
        )(inp_p, packed["w_gru"], packed["w_big"],
          packed["w_hid"], packed["b_all"])
        return out[:B, :V], out[:B, V:]

    return pack_params, forward, flatten_size, flat2_size


# --------------------------- parameter init --------------------------------- #

def linear_params(key, fan_in, fan_out):
    # PyTorch nn.Linear default init, stored transposed as [in, out].
    k1, k2 = jax.random.split(key)
    bound = 1.0 / float(fan_in) ** 0.5
    w = jax.random.uniform(k1, (fan_in, fan_out), jnp.float32, -bound, bound)
    b = jax.random.uniform(k2, (1, fan_out), jnp.float32, -bound, bound)
    return w, b


def init_raw_params(key, *, vocab, emb_size, length, jump, hdim1, hdim2, hdim):
    keys = jax.random.split(key, 24)
    flatten_size = hdim1 * (length // jump)              # unidirectional GRU
    flat2_size = flatten_size + emb_size * length

    bound = 1.0 / float(hdim1) ** 0.5
    p = {}
    # bootstrap (bsNN)
    p["bs_emb"] = jax.random.normal(keys[0], (vocab, emb_size), jnp.float32)
    p["gru_wih_t"] = jax.random.uniform(keys[1], (emb_size, 3 * hdim1), jnp.float32, -bound, bound)
    p["gru_whh_t"] = jax.random.uniform(keys[2], (hdim1, 3 * hdim1), jnp.float32, -bound, bound)
    p["gru_bih"] = jax.random.uniform(keys[3], (1, 3 * hdim1), jnp.float32, -bound, bound)
    p["gru_bhh"] = jax.random.uniform(keys[4], (1, 3 * hdim1), jnp.float32, -bound, bound)
    p["w_bslin1"], p["b_bslin1"] = linear_params(keys[5], flatten_size, hdim2)
    p["w_bsflin1"], p["b_bsflin1"] = linear_params(keys[6], flatten_size, vocab)
    p["w_bsflin2"], p["b_bsflin2"] = linear_params(keys[7], hdim2, vocab)

    # CombinedNN
    p["emb"] = jax.random.normal(keys[8], (vocab, emb_size), jnp.float32)
    p["w11"], p["b11"] = linear_params(keys[9], flat2_size, hdim)
    p["w12a"], p["b12a"] = linear_params(keys[10], hdim, hdim)
    p["w12b"], p["b12b"] = linear_params(keys[11], hdim, hdim)
    p["w13a"], p["b13a"] = linear_params(keys[12], hdim, hdim)
    p["w13b"], p["b13b"] = linear_params(keys[13], hdim, hdim)
    p["w2a"], p["b2a"] = linear_params(keys[14], flat2_size, hdim)
    p["w2b"], p["b2b"] = linear_params(keys[15], hdim, hdim)
    p["wl1"], p["bl1"] = linear_params(keys[16], flat2_size, vocab)
    p["wl2"], p["bl2"] = linear_params(keys[17], hdim, vocab)
    p["wl3"], p["bl3"] = linear_params(keys[18], hdim, vocab)
    wf, bf = linear_params(keys[19], 3 * vocab, vocab)    # final: Linear(3V, V)
    p["wf1"], p["wf2"], p["wf3"] = wf[:vocab], wf[vocab:2 * vocab], wf[2 * vocab:]
    p["bf"] = bf
    p["gate_w"] = jnp.zeros((1, 1), jnp.float32)          # self.weight = zeros([1])
    return p


# --------------------------- pure-JAX reference ------------------------------ #

def reference_forward(p, inp, *, jump):
    B, L = inp.shape
    H1 = p["gru_whh_t"].shape[0]
    emb = p["bs_emb"][inp]                                # [B, L, E]

    def cell(h, x_t):
        gi = x_t @ p["gru_wih_t"] + p["gru_bih"]
        gh = h @ p["gru_whh_t"] + p["gru_bhh"]
        r = jax.nn.sigmoid(gi[:, :H1] + gh[:, :H1])
        z = jax.nn.sigmoid(gi[:, H1:2 * H1] + gh[:, H1:2 * H1])
        n = jnp.tanh(gi[:, 2 * H1:] + r * gh[:, 2 * H1:])
        h_new = (1.0 - z) * n + z * h
        return h_new, h_new

    h0 = jnp.zeros((B, H1), jnp.float32)
    _, outs = jax.lax.scan(cell, h0, jnp.transpose(emb, (1, 0, 2)))
    output = jnp.transpose(outs, (1, 0, 2))               # [B, L, H1]
    flat = jnp.flip(output, axis=1)[:, ::jump, :].reshape(B, -1)

    x = jax.nn.relu(flat @ p["w_bslin1"] + p["b_bslin1"])
    new_logits = (flat @ p["w_bsflin1"] + p["b_bsflin1"]
                  + x @ p["w_bsflin2"] + p["b_bsflin2"])

    emb2 = p["emb"][inp].reshape(B, -1)
    flat2 = jnp.concatenate([emb2, flat], axis=1)
    d = jax.nn.relu(flat2 @ p["w11"] + p["b11"])
    xres = d
    d = (jax.nn.relu(jax.nn.relu(d) @ p["w12a"] + p["b12a"]) @ p["w12b"] + p["b12b"]) + xres
    xres = d
    d = (jax.nn.relu(jax.nn.relu(d) @ p["w13a"] + p["b13a"]) @ p["w13b"] + p["b13b"]) + xres
    e = jax.nn.relu(jax.nn.relu(flat2 @ p["w2a"] + p["b2a"]) @ p["w2b"] + p["b2b"])
    p1 = flat2 @ p["wl1"] + p["bl1"]
    p2 = d @ p["wl2"] + p["bl2"]
    p3 = e @ p["wl3"] + p["bl3"]
    pred = p1 @ p["wf1"] + p2 @ p["wf2"] + p3 @ p["wf3"] + p["bf"]
    g = jax.nn.sigmoid(p["gate_w"])
    final_logits = g * pred + (1 - g) * new_logits
    return (jax.nn.log_softmax(final_logits, axis=1),
            jax.nn.log_softmax(pred, axis=1))


# -------------------------------- main --------------------------------------- #

if __name__ == "__main__":
    vocab, emb_size, length, jump = 16, 8, 8, 4
    hdim1, hdim2, hdim, batch = 16, 16, 32, 2

    key = jax.random.PRNGKey(0)
    kp, ki = jax.random.split(key)
    raw = init_raw_params(kp, vocab=vocab, emb_size=emb_size, length=length,
                          jump=jump, hdim1=hdim1, hdim2=hdim2, hdim=hdim)
    pack_params, forward, flatten_size, flat2_size = make_combined(
        vocab=vocab, emb_size=emb_size, length=length, jump=jump,
        hdim1=hdim1, hdim2=hdim2, hdim=hdim)
    packed = pack_params(raw)

    inp = jax.random.randint(ki, (batch, length), 0, vocab, dtype=jnp.int32)

    out, pred_ls = forward(packed, inp)
    jax.block_until_ready((out, pred_ls))

    assert out.shape == (batch, vocab) and pred_ls.shape == (batch, vocab)
    # log_softmax rows should sum to 1 in prob space
    assert jnp.allclose(jnp.sum(jnp.exp(out), axis=-1), 1.0, atol=1e-4)
    assert jnp.allclose(jnp.sum(jnp.exp(pred_ls), axis=-1), 1.0, atol=1e-4)

    # sanity check vs. unfused pure-JAX reference (loose tol: MXU f32 rounding
    # + pack-time constant folds)
    ref_out, ref_pred = reference_forward(raw, inp, jump=jump)
    assert jnp.max(jnp.abs(out - ref_out)) < 2e-2
    assert jnp.max(jnp.abs(pred_ls - ref_pred)) < 2e-2

    print("KERNEL_OK")
</pallas_src>

<mosaic_0001>
module attributes {stable_mosaic.version = 11 : i64} {
  func.func @kernel(%arg0: i32, %arg1: memref<8x8xi32, #tpu.memory_space<vmem>>, %arg2: memref<33x384xf32, #tpu.memory_space<vmem>>, %arg3: memref<160x640xf32, #tpu.memory_space<vmem>>, %arg4: memref<32x1024xf32, #tpu.memory_space<vmem>>, %arg5: memref<13x128xf32, #tpu.memory_space<vmem>>, %arg6: memref<8x32xf32, #tpu.memory_space<vmem>>) attributes {dimension_semantics = [#tpu.dimension_semantics<parallel>], iteration_bounds = array<i64: 1>, scalar_prefetch = 0 : i64, scratch_operands = 0 : i64, tpu.core_type = #tpu.core_type<tc>, window_params = [{transform_indices = @transform_0, window_bounds = array<i64: 8, 8>}, {pipeline_mode = #tpu.pipeline_mode<synchronous>, transform_indices = @transform_1, window_bounds = array<i64: 33, 384>}, {pipeline_mode = #tpu.pipeline_mode<synchronous>, transform_indices = @transform_2, window_bounds = array<i64: 160, 640>}, {pipeline_mode = #tpu.pipeline_mode<synchronous>, transform_indices = @transform_3, window_bounds = array<i64: 32, 1024>}, {pipeline_mode = #tpu.pipeline_mode<synchronous>, transform_indices = @transform_4, window_bounds = array<i64: 13, 128>}, {transform_indices = @transform_5, window_bounds = array<i64: 8, 32>}]} {
    %c0 = arith.constant 0 : index
    %c0_0 = arith.constant 0 : index
    %0 = vector.load %arg5[%c0, %c0_0] : memref<13x128xf32, #tpu.memory_space<vmem>>, vector<13x128xf32>
    %c0_1 = arith.constant 0 : index
    %c0_2 = arith.constant 0 : index
    %1 = vector.load %arg1[%c0_1, %c0_2] : memref<8x8xi32, #tpu.memory_space<vmem>>, vector<8x8xi32>
    %2 = tpu.iota {dimensions = array<i32: 1>} : vector<8x16xi32>
    %3 = vector.extract_strided_slice %1 {offsets = [0, 0], sizes = [8, 1], strides = [1, 1]} : vector<8x8xi32> to vector<8x1xi32>
    %4 = vector.broadcast %3 : vector<8x1xi32> to vector<8x16xi32>
    %5 = arith.cmpi eq, %4, %2 : vector<8x16xi32>
    %cst = arith.constant 1.000000e+00 : f32
    %cst_3 = arith.constant 0.000000e+00 : f32
    %6 = vector.broadcast %cst : f32 to vector<8x16xf32>
    %7 = vector.broadcast %cst_3 : f32 to vector<8x16xf32>
    %8 = arith.select %5, %6, %7 : vector<8x16xi1>, vector<8x16xf32>
    %9 = vector.extract_strided_slice %1 {offsets = [0, 1], sizes = [8, 1], strides = [1, 1]} : vector<8x8xi32> to vector<8x1xi32>
    %10 = vector.broadcast %9 : vector<8x1xi32> to vector<8x16xi32>
    %11 = arith.cmpi eq, %10, %2 : vector<8x16xi32>
    %cst_4 = arith.constant 1.000000e+00 : f32
    %cst_5 = arith.constant 0.000000e+00 : f32
    %12 = vector.broadcast %cst_4 : f32 to vector<8x16xf32>
    %13 = vector.broadcast %cst_5 : f32 to vector<8x16xf32>
    %14 = arith.select %11, %12, %13 : vector<8x16xi1>, vector<8x16xf32>
    %15 = vector.extract_strided_slice %1 {offsets = [0, 2], sizes = [8, 1], strides = [1, 1]} : vector<8x8xi32> to vector<8x1xi32>
    %16 = vector.broadcast %15 : vector<8x1xi32> to vector<8x16xi32>
    %17 = arith.cmpi eq, %16, %2 : vector<8x16xi32>
    %cst_6 = arith.constant 1.000000e+00 : f32
    %cst_7 = arith.constant 0.000000e+00 : f32
    %18 = vector.broadcast %cst_6 : f32 to vector<8x16xf32>
    %19 = vector.broadcast %cst_7 : f32 to vector<8x16xf32>
    %20 = arith.select %17, %18, %19 : vector<8x16xi1>, vector<8x16xf32>
    %21 = vector.extract_strided_slice %1 {offsets = [0, 3], sizes = [8, 1], strides = [1, 1]} : vector<8x8xi32> to vector<8x1xi32>
    %22 = vector.broadcast %21 : vector<8x1xi32> to vector<8x16xi32>
    %23 = arith.cmpi eq, %22, %2 : vector<8x16xi32>
    %cst_8 = arith.constant 1.000000e+00 : f32
    %cst_9 = arith.constant 0.000000e+00 : f32
    %24 = vector.broadcast %cst_8 : f32 to vector<8x16xf32>
    %25 = vector.broadcast %cst_9 : f32 to vector<8x16xf32>
    %26 = arith.select %23, %24, %25 : vector<8x16xi1>, vector<8x16xf32>
    %27 = vector.extract_strided_slice %1 {offsets = [0, 4], sizes = [8, 1], strides = [1, 1]} : vector<8x8xi32> to vector<8x1xi32>
    %28 = vector.broadcast %27 : vector<8x1xi32> to vector<8x16xi32>
    %29 = arith.cmpi eq, %28, %2 : vector<8x16xi32>
    %cst_10 = arith.constant 1.000000e+00 : f32
    %cst_11 = arith.constant 0.000000e+00 : f32
    %30 = vector.broadcast %cst_10 : f32 to vector<8x16xf32>
    %31 = vector.broadcast %cst_11 : f32 to vector<8x16xf32>
    %32 = arith.select %29, %30, %31 : vector<8x16xi1>, vector<8x16xf32>
    %33 = vector.extract_strided_slice %1 {offsets = [0, 5], sizes = [8, 1], strides = [1, 1]} : vector<8x8xi32> to vector<8x1xi32>
    %34 = vector.broadcast %33 : vector<8x1xi32> to vector<8x16xi32>
    %35 = arith.cmpi eq, %34, %2 : vector<8x16xi32>
    %cst_12 = arith.constant 1.000000e+00 : f32
    %cst_13 = arith.constant 0.000000e+00 : f32
    %36 = vector.broadcast %cst_12 : f32 to vector<8x16xf32>
    %37 = vector.broadcast %cst_13 : f32 to vector<8x16xf32>
    %38 = arith.select %35, %36, %37 : vector<8x16xi1>, vector<8x16xf32>
    %39 = vector.extract_strided_slice %1 {offsets = [0, 6], sizes = [8, 1], strides = [1, 1]} : vector<8x8xi32> to vector<8x1xi32>
    %40 = vector.broadcast %39 : vector<8x1xi32> to vector<8x16xi32>
    %41 = arith.cmpi eq, %40, %2 : vector<8x16xi32>
    %cst_14 = arith.constant 1.000000e+00 : f32
    %cst_15 = arith.constant 0.000000e+00 : f32
    %42 = vector.broadcast %cst_14 : f32 to vector<8x16xf32>
    %43 = vector.broadcast %cst_15 : f32 to vector<8x16xf32>
    %44 = arith.select %41, %42, %43 : vector<8x16xi1>, vector<8x16xf32>
    %45 = vector.extract_strided_slice %1 {offsets = [0, 7], sizes = [8, 1], strides = [1, 1]} : vector<8x8xi32> to vector<8x1xi32>
    %46 = vector.broadcast %45 : vector<8x1xi32> to vector<8x16xi32>
    %47 = arith.cmpi eq, %46, %2 : vector<8x16xi32>
    %cst_16 = arith.constant 1.000000e+00 : f32
    %cst_17 = arith.constant 0.000000e+00 : f32
    %48 = vector.broadcast %cst_16 : f32 to vector<8x16xf32>
    %49 = vector.broadcast %cst_17 : f32 to vector<8x16xf32>
    %50 = arith.select %47, %48, %49 : vector<8x16xi1>, vector<8x16xf32>
    %c0_18 = arith.constant 0 : index
    %c0_19 = arith.constant 0 : index
    %51 = vector.load %arg2[%c0_18, %c0_19] : memref<33x384xf32, #tpu.memory_space<vmem>>, vector<33x384xf32>
    %52 = vector.extract_strided_slice %51 {offsets = [0, 0], sizes = [16, 384], strides = [1, 1]} : vector<33x384xf32> to vector<16x384xf32>
    %53 = vector.extract_strided_slice %51 {offsets = [16, 0], sizes = [16, 384], strides = [1, 1]} : vector<33x384xf32> to vector<16x384xf32>
    %54 = vector.extract_strided_slice %51 {offsets = [32, 0], sizes = [1, 384], strides = [1, 1]} : vector<33x384xf32> to vector<1x384xf32>
    %cst_20 = arith.constant 0.000000e+00 : f32
    %55 = vector.broadcast %cst_20 : f32 to vector<8x16xf32>
    %cst_21 = arith.constant dense<0.000000e+00> : vector<8x384xf32>
    %56 = tpu.matmul %8, %52, %cst_21 {dimension_numbers = #tpu.dot_dimension_numbers<[1], [0], [0], [1], [0, 0, 1, 1], [], []>} : vector<8x16xf32>, vector<16x384xf32>, vector<8x384xf32> -> vector<8x384xf32>
    %cst_22 = arith.constant dense<0.000000e+00> : vector<8x384xf32>
    %57 = tpu.matmul %55, %53, %cst_22 {dimension_numbers = #tpu.dot_dimension_numbers<[1], [0], [0], [1], [0, 0, 1, 1], [], []>} : vector<8x16xf32>, vector<16x384xf32>, vector<8x384xf32> -> vector<8x384xf32>
    %58 = vector.broadcast %54 : vector<1x384xf32> to vector<8x384xf32>
    %59 = arith.addf %57, %58 : vector<8x384xf32>
    %60 = vector.extract_strided_slice %56 {offsets = [0, 0], sizes = [8, 128], strides = [1, 1]} : vector<8x384xf32> to vector<8x128xf32>
    %61 = vector.extract_strided_slice %59 {offsets = [0, 0], sizes = [8, 128], strides = [1, 1]} : vector<8x384xf32> to vector<8x128xf32>
    %62 = arith.addf %60, %61 : vector<8x128xf32>
    %63 = arith.negf %62 : vector<8x128xf32>
    %64 = math.exp %63 : vector<8x128xf32>
    %cst_23 = arith.constant 1.000000e+00 : f32
    %65 = vector.broadcast %cst_23 : f32 to vector<8x128xf32>
    %66 = arith.addf %65, %64 : vector<8x128xf32>
    %67 = arith.divf %65, %66 : vector<8x128xf32>
    %68 = vector.extract_strided_slice %56 {offsets = [0, 128], sizes = [8, 128], strides = [1, 1]} : vector<8x384xf32> to vector<8x128xf32>
    %69 = vector.extract_strided_slice %59 {offsets = [0, 128], sizes = [8, 128], strides = [1, 1]} : vector<8x384xf32> to vector<8x128xf32>
    %70 = arith.addf %68, %69 : vector<8x128xf32>
    %71 = arith.negf %70 : vector<8x128xf32>
    %72 = math.exp %71 : vector<8x128xf32>
    %cst_24 = arith.constant 1.000000e+00 : f32
    %73 = vector.broadcast %cst_24 : f32 to vector<8x128xf32>
    %74 = arith.addf %73, %72 : vector<8x128xf32>
    %75 = arith.divf %73, %74 : vector<8x128xf32>
    %76 = vector.extract_strided_slice %56 {offsets = [0, 256], sizes = [8, 128], strides = [1, 1]} : vector<8x384xf32> to vector<8x128xf32>
    %77 = vector.extract_strided_slice %59 {offsets = [0, 256], sizes = [8, 128], strides = [1, 1]} : vector<8x384xf32> to vector<8x128xf32>
    %78 = arith.mulf %67, %77 : vector<8x128xf32>
    %79 = arith.addf %76, %78 : vector<8x128xf32>
    %80 = math.tanh %79 : vector<8x128xf32>
    %81 = vector.extract_strided_slice %75 {offsets = [0, 0], sizes = [8, 16], strides = [1, 1]} : vector<8x128xf32> to vector<8x16xf32>
    %cst_25 = arith.constant 1.000000e+00 : f32
    %82 = vector.broadcast %cst_25 : f32 to vector<8x16xf32>
    %83 = arith.subf %82, %81 : vector<8x16xf32>
    %84 = vector.extract_strided_slice %80 {offsets = [0, 0], sizes = [8, 16], strides = [1, 1]} : vector<8x128xf32> to vector<8x16xf32>
    %85 = arith.mulf %83, %84 : vector<8x16xf32>
    %86 = vector.extract_strided_slice %75 {offsets = [0, 0], sizes = [8, 16], strides = [1, 1]} : vector<8x128xf32> to vector<8x16xf32>
    %87 = arith.mulf %86, %55 : vector<8x16xf32>
    %88 = arith.addf %85, %87 : vector<8x16xf32>
    %cst_26 = arith.constant dense<0.000000e+00> : vector<8x384xf32>
    %89 = tpu.matmul %14, %52, %cst_26 {dimension_numbers = #tpu.dot_dimension_numbers<[1], [0], [0], [1], [0, 0, 1, 1], [], []>} : vector<8x16xf32>, vector<16x384xf32>, vector<8x384xf32> -> vector<8x384xf32>
    %cst_27 = arith.constant dense<0.000000e+00> : vector<8x384xf32>
    %90 = tpu.matmul %88, %53, %cst_27 {dimension_numbers = #tpu.dot_dimension_numbers<[1], [0], [0], [1], [0, 0, 1, 1], [], []>} : vector<8x16xf32>, vector<16x384xf32>, vector<8x384xf32> -> vector<8x384xf32>
    %91 = vector.broadcast %54 : vector<1x384xf32> to vector<8x384xf32>
    %92 = arith.addf %90, %91 : vector<8x384xf32>
    %93 = vector.extract_strided_slice %89 {offsets = [0, 0], sizes = [8, 128], strides = [1, 1]} : vector<8x384xf32> to vector<8x128xf32>
    %94 = vector.extract_strided_slice %92 {offsets = [0, 0], sizes = [8, 128], strides = [1, 1]} : vector<8x384xf32> to vector<8x128xf32>
    %95 = arith.addf %93, %94 : vector<8x128xf32>
    %96 = arith.negf %95 : vector<8x128xf32>
    %97 = math.exp %96 : vector<8x128xf32>
    %cst_28 = arith.constant 1.000000e+00 : f32
    %98 = vector.broadcast %cst_28 : f32 to vector<8x128xf32>
    %99 = arith.addf %98, %97 : vector<8x128xf32>
    %100 = arith.divf %98, %99 : vector<8x128xf32>
    %101 = vector.extract_strided_slice %89 {offsets = [0, 128], sizes = [8, 128], strides = [1, 1]} : vector<8x384xf32> to vector<8x128xf32>
    %102 = vector.extract_strided_slice %92 {offsets = [0, 128], sizes = [8, 128], strides = [1, 1]} : vector<8x384xf32> to vector<8x128xf32>
    %103 = arith.addf %101, %102 : vector<8x128xf32>
    %104 = arith.negf %103 : vector<8x128xf32>
    %105 = math.exp %104 : vector<8x128xf32>
    %cst_29 = arith.constant 1.000000e+00 : f32
    %106 = vector.broadcast %cst_29 : f32 to vector<8x128xf32>
    %107 = arith.addf %106, %105 : vector<8x128xf32>
    %108 = arith.divf %106, %107 : vector<8x128xf32>
    %109 = vector.extract_strided_slice %89 {offsets = [0, 256], sizes = [8, 128], strides = [1, 1]} : vector<8x384xf32> to vector<8x128xf32>
    %110 = vector.extract_strided_slice %92 {offsets = [0, 256], sizes = [8, 128], strides = [1, 1]} : vector<8x384xf32> to vector<8x128xf32>
    %111 = arith.mulf %100, %110 : vector<8x128xf32>
    %112 = arith.addf %109, %111 : vector<8x128xf32>
    %113 = math.tanh %112 : vector<8x128xf32>
    %114 = vector.extract_strided_slice %108 {offsets = [0, 0], sizes = [8, 16], strides = [1, 1]} : vector<8x128xf32> to vector<8x16xf32>
    %cst_30 = arith.constant 1.000000e+00 : f32
    %115 = vector.broadcast %cst_30 : f32 to vector<8x16xf32>
    %116 = arith.subf %115, %114 : vector<8x16xf32>
    %117 = vector.extract_strided_slice %113 {offsets = [0, 0], sizes = [8, 16], strides = [1, 1]} : vector<8x128xf32> to vector<8x16xf32>
    %118 = arith.mulf %116, %117 : vector<8x16xf32>
    %119 = vector.extract_strided_slice %108 {offsets = [0, 0], sizes = [8, 16], strides = [1, 1]} : vector<8x128xf32> to vector<8x16xf32>
    %120 = arith.mulf %119, %88 : vector<8x16xf32>
    %121 = arith.addf %118, %120 : vector<8x16xf32>
    %cst_31 = arith.constant dense<0.000000e+00> : vector<8x384xf32>
    %122 = tpu.matmul %20, %52, %cst_31 {dimension_numbers = #tpu.dot_dimension_numbers<[1], [0], [0], [1], [0, 0, 1, 1], [], []>} : vector<8x16xf32>, vector<16x384xf32>, vector<8x384xf32> -> vector<8x384xf32>
    %cst_32 = arith.constant dense<0.000000e+00> : vector<8x384xf32>
    %123 = tpu.matmul %121, %53, %cst_32 {dimension_numbers = #tpu.dot_dimension_numbers<[1], [0], [0], [1], [0, 0, 1, 1], [], []>} : vector<8x16xf32>, vector<16x384xf32>, vector<8x384xf32> -> vector<8x384xf32>
    %124 = vector.broadcast %54 : vector<1x384xf32> to vector<8x384xf32>
    %125 = arith.addf %123, %124 : vector<8x384xf32>
    %126 = vector.extract_strided_slice %122 {offsets = [0, 0], sizes = [8, 128], strides = [1, 1]} : vector<8x384xf32> to vector<8x128xf32>
    %127 = vector.extract_strided_slice %125 {offsets = [0, 0], sizes = [8, 128], strides = [1, 1]} : vector<8x384xf32> to vector<8x128xf32>
    %128 = arith.addf %126, %127 : vector<8x128xf32>
    %129 = arith.negf %128 : vector<8x128xf32>
    %130 = math.exp %129 : vector<8x128xf32>
    %cst_33 = arith.constant 1.000000e+00 : f32
    %131 = vector.broadcast %cst_33 : f32 to vector<8x128xf32>
    %132 = arith.addf %131, %130 : vector<8x128xf32>
    %133 = arith.divf %131, %132 : vector<8x128xf32>
    %134 = vector.extract_strided_slice %122 {offsets = [0, 128], sizes = [8, 128], strides = [1, 1]} : vector<8x384xf32> to vector<8x128xf32>
    %135 = vector.extract_strided_slice %125 {offsets = [0, 128], sizes = [8, 128], strides = [1, 1]} : vector<8x384xf32> to vector<8x128xf32>
    %136 = arith.addf %134, %135 : vector<8x128xf32>
    %137 = arith.negf %136 : vector<8x128xf32>
    %138 = math.exp %137 : vector<8x128xf32>
    %cst_34 = arith.constant 1.000000e+00 : f32
    %139 = vector.broadcast %cst_34 : f32 to vector<8x128xf32>
    %140 = arith.addf %139, %138 : vector<8x128xf32>
    %141 = arith.divf %139, %140 : vector<8x128xf32>
    %142 = vector.extract_strided_slice %122 {offsets = [0, 256], sizes = [8, 128], strides = [1, 1]} : vector<8x384xf32> to vector<8x128xf32>
    %143 = vector.extract_strided_slice %125 {offsets = [0, 256], sizes = [8, 128], strides = [1, 1]} : vector<8x384xf32> to vector<8x128xf32>
    %144 = arith.mulf %133, %143 : vector<8x128xf32>
    %145 = arith.addf %142, %144 : vector<8x128xf32>
    %146 = math.tanh %145 : vector<8x128xf32>
    %147 = vector.extract_strided_slice %141 {offsets = [0, 0], sizes = [8, 16], strides = [1, 1]} : vector<8x128xf32> to vector<8x16xf32>
    %cst_35 = arith.constant 1.000000e+00 : f32
    %148 = vector.broadcast %cst_35 : f32 to vector<8x16xf32>
    %149 = arith.subf %148, %147 : vector<8x16xf32>
    %150 = vector.extract_strided_slice %146 {offsets = [0, 0], sizes = [8, 16], strides = [1, 1]} : vector<8x128xf32> to vector<8x16xf32>
    %151 = arith.mulf %149, %150 : vector<8x16xf32>
    %152 = vector.extract_strided_slice %141 {offsets = [0, 0], sizes = [8, 16], strides = [1, 1]} : vector<8x128xf32> to vector<8x16xf32>
    %153 = arith.mulf %152, %121 : vector<8x16xf32>
    %154 = arith.addf %151, %153 : vector<8x16xf32>
    %cst_36 = arith.constant dense<0.000000e+00> : vector<8x384xf32>
    %155 = tpu.matmul %26, %52, %cst_36 {dimension_numbers = #tpu.dot_dimension_numbers<[1], [0], [0], [1], [0, 0, 1, 1], [], []>} : vector<8x16xf32>, vector<16x384xf32>, vector<8x384xf32> -> vector<8x384xf32>
    %cst_37 = arith.constant dense<0.000000e+00> : vector<8x384xf32>
    %156 = tpu.matmul %154, %53, %cst_37 {dimension_numbers = #tpu.dot_dimension_numbers<[1], [0], [0], [1], [0, 0, 1, 1], [], []>} : vector<8x16xf32>, vector<16x384xf32>, vector<8x384xf32> -> vector<8x384xf32>
    %157 = vector.broadcast %54 : vector<1x384xf32> to vector<8x384xf32>
    %158 = arith.addf %156, %157 : vector<8x384xf32>
    %159 = vector.extract_strided_slice %155 {offsets = [0, 0], sizes = [8, 128], strides = [1, 1]} : vector<8x384xf32> to vector<8x128xf32>
    %160 = vector.extract_strided_slice %158 {offsets = [0, 0], sizes = [8, 128], strides = [1, 1]} : vector<8x384xf32> to vector<8x128xf32>
    %161 = arith.addf %159, %160 : vector<8x128xf32>
    %162 = arith.negf %161 : vector<8x128xf32>
    %163 = math.exp %162 : vector<8x128xf32>
    %cst_38 = arith.constant 1.000000e+00 : f32
    %164 = vector.broadcast %cst_38 : f32 to vector<8x128xf32>
    %165 = arith.addf %164, %163 : vector<8x128xf32>
    %166 = arith.divf %164, %165 : vector<8x128xf32>
    %167 = vector.extract_strided_slice %155 {offsets = [0, 128], sizes = [8, 128], strides = [1, 1]} : vector<8x384xf32> to vector<8x128xf32>
    %168 = vector.extract_strided_slice %158 {offsets = [0, 128], sizes = [8, 128], strides = [1, 1]} : vector<8x384xf32> to vector<8x128xf32>
    %169 = arith.addf %167, %168 : vector<8x128xf32>
    %170 = arith.negf %169 : vector<8x128xf32>
    %171 = math.exp %170 : vector<8x128xf32>
    %cst_39 = arith.constant 1.000000e+00 : f32
    %172 = vector.broadcast %cst_39 : f32 to vector<8x128xf32>
    %173 = arith.addf %172, %171 : vector<8x128xf32>
    %174 = arith.divf %172, %173 : vector<8x128xf32>
    %175 = vector.extract_strided_slice %155 {offsets = [0, 256], sizes = [8, 128], strides = [1, 1]} : vector<8x384xf32> to vector<8x128xf32>
    %176 = vector.extract_strided_slice %158 {offsets = [0, 256], sizes = [8, 128], strides = [1, 1]} : vector<8x384xf32> to vector<8x128xf32>
    %177 = arith.mulf %166, %176 : vector<8x128xf32>
    %178 = arith.addf %175, %177 : vector<8x128xf32>
    %179 = math.tanh %178 : vector<8x128xf32>
    %180 = vector.extract_strided_slice %174 {offsets = [0, 0], sizes = [8, 16], strides = [1, 1]} : vector<8x128xf32> to vector<8x16xf32>
    %cst_40 = arith.constant 1.000000e+00 : f32
    %181 = vector.broadcast %cst_40 : f32 to vector<8x16xf32>
    %182 = arith.subf %181, %180 : vector<8x16xf32>
    %183 = vector.extract_strided_slice %179 {offsets = [0, 0], sizes = [8, 16], strides = [1, 1]} : vector<8x128xf32> to vector<8x16xf32>
    %184 = arith.mulf %182, %183 : vector<8x16xf32>
    %185 = vector.extract_strided_slice %174 {offsets = [0, 0], sizes = [8, 16], strides = [1, 1]} : vector<8x128xf32> to vector<8x16xf32>
    %186 = arith.mulf %185, %154 : vector<8x16xf32>
    %187 = arith.addf %184, %186 : vector<8x16xf32>
    %cst_41 = arith.constant dense<0.000000e+00> : vector<8x384xf32>
    %188 = tpu.matmul %32, %52, %cst_41 {dimension_numbers = #tpu.dot_dimension_numbers<[1], [0], [0], [1], [0, 0, 1, 1], [], []>} : vector<8x16xf32>, vector<16x384xf32>, vector<8x384xf32> -> vector<8x384xf32>
    %cst_42 = arith.constant dense<0.000000e+00> : vector<8x384xf32>
    %189 = tpu.matmul %187, %53, %cst_42 {dimension_numbers = #tpu.dot_dimension_numbers<[1], [0], [0], [1], [0, 0, 1, 1], [], []>} : vector<8x16xf32>, vector<16x384xf32>, vector<8x384xf32> -> vector<8x384xf32>
    %190 = vector.broadcast %54 : vector<1x384xf32> to vector<8x384xf32>
    %191 = arith.addf %189, %190 : vector<8x384xf32>
    %192 = vector.extract_strided_slice %188 {offsets = [0, 0], sizes = [8, 128], strides = [1, 1]} : vector<8x384xf32> to vector<8x128xf32>
    %193 = vector.extract_strided_slice %191 {offsets = [0, 0], sizes = [8, 128], strides = [1, 1]} : vector<8x384xf32> to vector<8x128xf32>
    %194 = arith.addf %192, %193 : vector<8x128xf32>
    %195 = arith.negf %194 : vector<8x128xf32>
    %196 = math.exp %195 : vector<8x128xf32>
    %cst_43 = arith.constant 1.000000e+00 : f32
    %197 = vector.broadcast %cst_43 : f32 to vector<8x128xf32>
    %198 = arith.addf %197, %196 : vector<8x128xf32>
    %199 = arith.divf %197, %198 : vector<8x128xf32>
    %200 = vector.extract_strided_slice %188 {offsets = [0, 128], sizes = [8, 128], strides = [1, 1]} : vector<8x384xf32> to vector<8x128xf32>
    %201 = vector.extract_strided_slice %191 {offsets = [0, 128], sizes = [8, 128], strides = [1, 1]} : vector<8x384xf32> to vector<8x128xf32>
    %202 = arith.addf %200, %201 : vector<8x128xf32>
    %203 = arith.negf %202 : vector<8x128xf32>
    %204 = math.exp %203 : vector<8x128xf32>
    %cst_44 = arith.constant 1.000000e+00 : f32
    %205 = vector.broadcast %cst_44 : f32 to vector<8x128xf32>
    %206 = arith.addf %205, %204 : vector<8x128xf32>
    %207 = arith.divf %205, %206 : vector<8x128xf32>
    %208 = vector.extract_strided_slice %188 {offsets = [0, 256], sizes = [8, 128], strides = [1, 1]} : vector<8x384xf32> to vector<8x128xf32>
    %209 = vector.extract_strided_slice %191 {offsets = [0, 256], sizes = [8, 128], strides = [1, 1]} : vector<8x384xf32> to vector<8x128xf32>
    %210 = arith.mulf %199, %209 : vector<8x128xf32>
    %211 = arith.addf %208, %210 : vector<8x128xf32>
    %212 = math.tanh %211 : vector<8x128xf32>
    %213 = vector.extract_strided_slice %207 {offsets = [0, 0], sizes = [8, 16], strides = [1, 1]} : vector<8x128xf32> to vector<8x16xf32>
    %cst_45 = arith.constant 1.000000e+00 : f32
    %214 = vector.broadcast %cst_45 : f32 to vector<8x16xf32>
    %215 = arith.subf %214, %213 : vector<8x16xf32>
    %216 = vector.extract_strided_slice %212 {offsets = [0, 0], sizes = [8, 16], strides = [1, 1]} : vector<8x128xf32> to vector<8x16xf32>
    %217 = arith.mulf %215, %216 : vector<8x16xf32>
    %218 = vector.extract_strided_slice %207 {offsets = [0, 0], sizes = [8, 16], strides = [1, 1]} : vector<8x128xf32> to vector<8x16xf32>
    %219 = arith.mulf %218, %187 : vector<8x16xf32>
    %220 = arith.addf %217, %219 : vector<8x16xf32>
    %cst_46 = arith.constant dense<0.000000e+00> : vector<8x384xf32>
    %221 = tpu.matmul %38, %52, %cst_46 {dimension_numbers = #tpu.dot_dimension_numbers<[1], [0], [0], [1], [0, 0, 1, 1], [], []>} : vector<8x16xf32>, vector<16x384xf32>, vector<8x384xf32> -> vector<8x384xf32>
    %cst_47 = arith.constant dense<0.000000e+00> : vector<8x384xf32>
    %222 = tpu.matmul %220, %53, %cst_47 {dimension_numbers = #tpu.dot_dimension_numbers<[1], [0], [0], [1], [0, 0, 1, 1], [], []>} : vector<8x16xf32>, vector<16x384xf32>, vector<8x384xf32> -> vector<8x384xf32>
    %223 = vector.broadcast %54 : vector<1x384xf32> to vector<8x384xf32>
    %224 = arith.addf %222, %223 : vector<8x384xf32>
    %225 = vector.extract_strided_slice %221 {offsets = [0, 0], sizes = [8, 128], strides = [1, 1]} : vector<8x384xf32> to vector<8x128xf32>
    %226 = vector.extract_strided_slice %224 {offsets = [0, 0], sizes = [8, 128], strides = [1, 1]} : vector<8x384xf32> to vector<8x128xf32>
    %227 = arith.addf %225, %226 : vector<8x128xf32>
    %228 = arith.negf %227 : vector<8x128xf32>
    %229 = math.exp %228 : vector<8x128xf32>
    %cst_48 = arith.constant 1.000000e+00 : f32
    %230 = vector.broadcast %cst_48 : f32 to vector<8x128xf32>
    %231 = arith.addf %230, %229 : vector<8x128xf32>
    %232 = arith.divf %230, %231 : vector<8x128xf32>
    %233 = vector.extract_strided_slice %221 {offsets = [0, 128], sizes = [8, 128], strides = [1, 1]} : vector<8x384xf32> to vector<8x128xf32>
    %234 = vector.extract_strided_slice %224 {offsets = [0, 128], sizes = [8, 128], strides = [1, 1]} : vector<8x384xf32> to vector<8x128xf32>
    %235 = arith.addf %233, %234 : vector<8x128xf32>
    %236 = arith.negf %235 : vector<8x128xf32>
    %237 = math.exp %236 : vector<8x128xf32>
    %cst_49 = arith.constant 1.000000e+00 : f32
    %238 = vector.broadcast %cst_49 : f32 to vector<8x128xf32>
    %239 = arith.addf %238, %237 : vector<8x128xf32>
    %240 = arith.divf %238, %239 : vector<8x128xf32>
    %241 = vector.extract_strided_slice %221 {offsets = [0, 256], sizes = [8, 128], strides = [1, 1]} : vector<8x384xf32> to vector<8x128xf32>
    %242 = vector.extract_strided_slice %224 {offsets = [0, 256], sizes = [8, 128], strides = [1, 1]} : vector<8x384xf32> to vector<8x128xf32>
    %243 = arith.mulf %232, %242 : vector<8x128xf32>
    %244 = arith.addf %241, %243 : vector<8x128xf32>
    %245 = math.tanh %244 : vector<8x128xf32>
    %246 = vector.extract_strided_slice %240 {offsets = [0, 0], sizes = [8, 16], strides = [1, 1]} : vector<8x128xf32> to vector<8x16xf32>
    %cst_50 = arith.constant 1.000000e+00 : f32
    %247 = vector.broadcast %cst_50 : f32 to vector<8x16xf32>
    %248 = arith.subf %247, %246 : vector<8x16xf32>
    %249 = vector.extract_strided_slice %245 {offsets = [0, 0], sizes = [8, 16], strides = [1, 1]} : vector<8x128xf32> to vector<8x16xf32>
    %250 = arith.mulf %248, %249 : vector<8x16xf32>
    %251 = vector.extract_strided_slice %240 {offsets = [0, 0], sizes = [8, 16], strides = [1, 1]} : vector<8x128xf32> to vector<8x16xf32>
    %252 = arith.mulf %251, %220 : vector<8x16xf32>
    %253 = arith.addf %250, %252 : vector<8x16xf32>
    %cst_51 = arith.constant dense<0.000000e+00> : vector<8x384xf32>
    %254 = tpu.matmul %44, %52, %cst_51 {dimension_numbers = #tpu.dot_dimension_numbers<[1], [0], [0], [1], [0, 0, 1, 1], [], []>} : vector<8x16xf32>, vector<16x384xf32>, vector<8x384xf32> -> vector<8x384xf32>
    %cst_52 = arith.constant dense<0.000000e+00> : vector<8x384xf32>
    %255 = tpu.matmul %253, %53, %cst_52 {dimension_numbers = #tpu.dot_dimension_numbers<[1], [0], [0], [1], [0, 0, 1, 1], [], []>} : vector<8x16xf32>, vector<16x384xf32>, vector<8x384xf32> -> vector<8x384xf32>
    %256 = vector.broadcast %54 : vector<1x384xf32> to vector<8x384xf32>
    %257 = arith.addf %255, %256 : vector<8x384xf32>
    %258 = vector.extract_strided_slice %254 {offsets = [0, 0], sizes = [8, 128], strides = [1, 1]} : vector<8x384xf32> to vector<8x128xf32>
    %259 = vector.extract_strided_slice %257 {offsets = [0, 0], sizes = [8, 128], strides = [1, 1]} : vector<8x384xf32> to vector<8x128xf32>
    %260 = arith.addf %258, %259 : vector<8x128xf32>
    %261 = arith.negf %260 : vector<8x128xf32>
    %262 = math.exp %261 : vector<8x128xf32>
    %cst_53 = arith.constant 1.000000e+00 : f32
    %263 = vector.broadcast %cst_53 : f32 to vector<8x128xf32>
    %264 = arith.addf %263, %262 : vector<8x128xf32>
    %265 = arith.divf %263, %264 : vector<8x128xf32>
    %266 = vector.extract_strided_slice %254 {offsets = [0, 128], sizes = [8, 128], strides = [1, 1]} : vector<8x384xf32> to vector<8x128xf32>
    %267 = vector.extract_strided_slice %257 {offsets = [0, 128], sizes = [8, 128], strides = [1, 1]} : vector<8x384xf32> to vector<8x128xf32>
    %268 = arith.addf %266, %267 : vector<8x128xf32>
    %269 = arith.negf %268 : vector<8x128xf32>
    %270 = math.exp %269 : vector<8x128xf32>
    %cst_54 = arith.constant 1.000000e+00 : f32
    %271 = vector.broadcast %cst_54 : f32 to vector<8x128xf32>
    %272 = arith.addf %271, %270 : vector<8x128xf32>
    %273 = arith.divf %271, %272 : vector<8x128xf32>
    %274 = vector.extract_strided_slice %254 {offsets = [0, 256], sizes = [8, 128], strides = [1, 1]} : vector<8x384xf32> to vector<8x128xf32>
    %275 = vector.extract_strided_slice %257 {offsets = [0, 256], sizes = [8, 128], strides = [1, 1]} : vector<8x384xf32> to vector<8x128xf32>
    %276 = arith.mulf %265, %275 : vector<8x128xf32>
    %277 = arith.addf %274, %276 : vector<8x128xf32>
    %278 = math.tanh %277 : vector<8x128xf32>
    %279 = vector.extract_strided_slice %273 {offsets = [0, 0], sizes = [8, 16], strides = [1, 1]} : vector<8x128xf32> to vector<8x16xf32>
    %cst_55 = arith.constant 1.000000e+00 : f32
    %280 = vector.broadcast %cst_55 : f32 to vector<8x16xf32>
    %281 = arith.subf %280, %279 : vector<8x16xf32>
    %282 = vector.extract_strided_slice %278 {offsets = [0, 0], sizes = [8, 16], strides = [1, 1]} : vector<8x128xf32> to vector<8x16xf32>
    %283 = arith.mulf %281, %282 : vector<8x16xf32>
    %284 = vector.extract_strided_slice %273 {offsets = [0, 0], sizes = [8, 16], strides = [1, 1]} : vector<8x128xf32> to vector<8x16xf32>
    %285 = arith.mulf %284, %253 : vector<8x16xf32>
    %286 = arith.addf %283, %285 : vector<8x16xf32>
    %cst_56 = arith.constant dense<0.000000e+00> : vector<8x384xf32>
    %287 = tpu.matmul %50, %52, %cst_56 {dimension_numbers = #tpu.dot_dimension_numbers<[1], [0], [0], [1], [0, 0, 1, 1], [], []>} : vector<8x16xf32>, vector<16x384xf32>, vector<8x384xf32> -> vector<8x384xf32>
    %cst_57 = arith.constant dense<0.000000e+00> : vector<8x384xf32>
    %288 = tpu.matmul %286, %53, %cst_57 {dimension_numbers = #tpu.dot_dimension_numbers<[1], [0], [0], [1], [0, 0, 1, 1], [], []>} : vector<8x16xf32>, vector<16x384xf32>, vector<8x384xf32> -> vector<8x384xf32>
    %289 = vector.broadcast %54 : vector<1x384xf32> to vector<8x384xf32>
    %290 = arith.addf %288, %289 : vector<8x384xf32>
    %291 = vector.extract_strided_slice %287 {offsets = [0, 0], sizes = [8, 128], strides = [1, 1]} : vector<8x384xf32> to vector<8x128xf32>
    %292 = vector.extract_strided_slice %290 {offsets = [0, 0], sizes = [8, 128], strides = [1, 1]} : vector<8x384xf32> to vector<8x128xf32>
    %293 = arith.addf %291, %292 : vector<8x128xf32>
    %294 = arith.negf %293 : vector<8x128xf32>
    %295 = math.exp %294 : vector<8x128xf32>
    %cst_58 = arith.constant 1.000000e+00 : f32
    %296 = vector.broadcast %cst_58 : f32 to vector<8x128xf32>
    %297 = arith.addf %296, %295 : vector<8x128xf32>
    %298 = arith.divf %296, %297 : vector<8x128xf32>
    %299 = vector.extract_strided_slice %287 {offsets = [0, 128], sizes = [8, 128], strides = [1, 1]} : vector<8x384xf32> to vector<8x128xf32>
    %300 = vector.extract_strided_slice %290 {offsets = [0, 128], sizes = [8, 128], strides = [1, 1]} : vector<8x384xf32> to vector<8x128xf32>
    %301 = arith.addf %299, %300 : vector<8x128xf32>
    %302 = arith.negf %301 : vector<8x128xf32>
    %303 = math.exp %302 : vector<8x128xf32>
    %cst_59 = arith.constant 1.000000e+00 : f32
    %304 = vector.broadcast %cst_59 : f32 to vector<8x128xf32>
    %305 = arith.addf %304, %303 : vector<8x128xf32>
    %306 = arith.divf %304, %305 : vector<8x128xf32>
    %307 = vector.extract_strided_slice %287 {offsets = [0, 256], sizes = [8, 128], strides = [1, 1]} : vector<8x384xf32> to vector<8x128xf32>
    %308 = vector.extract_strided_slice %290 {offsets = [0, 256], sizes = [8, 128], strides = [1, 1]} : vector<8x384xf32> to vector<8x128xf32>
    %309 = arith.mulf %298, %308 : vector<8x128xf32>
    %310 = arith.addf %307, %309 : vector<8x128xf32>
    %311 = math.tanh %310 : vector<8x128xf32>
    %312 = vector.extract_strided_slice %306 {offsets = [0, 0], sizes = [8, 16], strides = [1, 1]} : vector<8x128xf32> to vector<8x16xf32>
    %cst_60 = arith.constant 1.000000e+00 : f32
    %313 = vector.broadcast %cst_60 : f32 to vector<8x16xf32>
    %314 = arith.subf %313, %312 : vector<8x16xf32>
    %315 = vector.extract_strided_slice %311 {offsets = [0, 0], sizes = [8, 16], strides = [1, 1]} : vector<8x128xf32> to vector<8x16xf32>
    %316 = arith.mulf %314, %315 : vector<8x16xf32>
    %317 = vector.extract_strided_slice %306 {offsets = [0, 0], sizes = [8, 16], strides = [1, 1]} : vector<8x128xf32> to vector<8x16xf32>
    %318 = arith.mulf %317, %286 : vector<8x16xf32>
    %319 = arith.addf %316, %318 : vector<8x16xf32>
    %320 = tpu.concatenate %319, %187 in 1 : vector<8x16xf32>, vector<8x16xf32> -> vector<8x32xf32>
    %321 = tpu.concatenate %8, %14, %20, %26, %32, %38, %44, %50 in 1 : vector<8x16xf32>, vector<8x16xf32>, vector<8x16xf32>, vector<8x16xf32>, vector<8x16xf32>, vector<8x16xf32>, vector<8x16xf32>, vector<8x16xf32> -> vector<8x128xf32>
    %322 = tpu.concatenate %321, %320 in 1 : vector<8x128xf32>, vector<8x32xf32> -> vector<8x160xf32>
    %c0_61 = arith.constant 0 : index
    %c0_62 = arith.constant 0 : index
    %323 = vector.load %arg3[%c0_61, %c0_62] : memref<160x640xf32, #tpu.memory_space<vmem>>, vector<160x640xf32>
    %cst_63 = arith.constant dense<0.000000e+00> : vector<8x640xf32>
    %324 = tpu.matmul %322, %323, %cst_63 {dimension_numbers = #tpu.dot_dimension_numbers<[1], [0], [0], [1], [0, 0, 1, 1], [], []>} : vector<8x160xf32>, vector<160x640xf32>, vector<8x640xf32> -> vector<8x640xf32>
    %325 = vector.extract_strided_slice %324 {offsets = [0, 0], sizes = [8, 128], strides = [1, 1]} : vector<8x640xf32> to vector<8x128xf32>
    %326 = vector.extract_strided_slice %0 {offsets = [0, 0], sizes = [1, 128], strides = [1, 1]} : vector<13x128xf32> to vector<1x128xf32>
    %327 = vector.broadcast %326 : vector<1x128xf32> to vector<8x128xf32>
    %328 = arith.addf %325, %327 : vector<8x128xf32>
    %cst_64 = arith.constant 0.000000e+00 : f32
    %329 = vector.broadcast %cst_64 : f32 to vector<8x128xf32>
    %330 = arith.maximumf %328, %329 : vector<8x128xf32>
    %331 = vector.extract_strided_slice %324 {offsets = [0, 128], sizes = [8, 128], strides = [1, 1]} : vector<8x640xf32> to vector<8x128xf32>
    %332 = vector.extract_strided_slice %0 {offsets = [1, 0], sizes = [1, 128], strides = [1, 1]} : vector<13x128xf32> to vector<1x128xf32>
    %333 = vector.broadcast %332 : vector<1x128xf32> to vector<8x128xf32>
    %334 = arith.addf %331, %333 : vector<8x128xf32>
    %cst_65 = arith.constant 0.000000e+00 : f32
    %335 = vector.broadcast %cst_65 : f32 to vector<8x128xf32>
    %336 = arith.maximumf %334, %335 : vector<8x128xf32>
    %337 = vector.extract_strided_slice %324 {offsets = [0, 256], sizes = [8, 128], strides = [1, 1]} : vector<8x640xf32> to vector<8x128xf32>
    %338 = vector.extract_strided_slice %0 {offsets = [2, 0], sizes = [1, 128], strides = [1, 1]} : vector<13x128xf32> to vector<1x128xf32>
    %339 = vector.broadcast %338 : vector<1x128xf32> to vector<8x128xf32>
    %340 = arith.addf %337, %339 : vector<8x128xf32>
    %341 = vector.extract_strided_slice %324 {offsets = [0, 384], sizes = [8, 128], strides = [1, 1]} : vector<8x640xf32> to vector<8x128xf32>
    %342 = vector.extract_strided_slice %0 {offsets = [3, 0], sizes = [1, 128], strides = [1, 1]} : vector<13x128xf32> to vector<1x128xf32>
    %343 = vector.broadcast %342 : vector<1x128xf32> to vector<8x128xf32>
    %344 = arith.addf %341, %343 : vector<8x128xf32>
    %cst_66 = arith.constant 0.000000e+00 : f32
    %345 = vector.broadcast %cst_66 : f32 to vector<8x128xf32>
    %346 = arith.maximumf %344, %345 : vector<8x128xf32>
    %347 = vector.extract_strided_slice %324 {offsets = [0, 512], sizes = [8, 128], strides = [1, 1]} : vector<8x640xf32> to vector<8x128xf32>
    %348 = vector.extract_strided_slice %0 {offsets = [4, 0], sizes = [1, 128], strides = [1, 1]} : vector<13x128xf32> to vector<1x128xf32>
    %349 = vector.broadcast %348 : vector<1x128xf32> to vector<8x128xf32>
    %350 = arith.addf %347, %349 : vector<8x128xf32>
    %c0_67 = arith.constant 0 : index
    %c0_68 = arith.constant 0 : index
    %351 = vector.load %arg4[%c0_67, %c0_68] : memref<32x1024xf32, #tpu.memory_space<vmem>>, vector<32x1024xf32>
    %cst_69 = arith.constant 0.000000e+00 : f32
    %352 = vector.broadcast %cst_69 : f32 to vector<8x128xf32>
    %353 = arith.maximumf %330, %352 : vector<8x128xf32>
    %354 = vector.extract_strided_slice %353 {offsets = [0, 0], sizes = [8, 32], strides = [1, 1]} : vector<8x128xf32> to vector<8x32xf32>
    %355 = vector.extract_strided_slice %351 {offsets = [0, 0], sizes = [32, 128], strides = [1, 1]} : vector<32x1024xf32> to vector<32x128xf32>
    %cst_70 = arith.constant dense<0.000000e+00> : vector<8x128xf32>
    %356 = tpu.matmul %354, %355, %cst_70 {dimension_numbers = #tpu.dot_dimension_numbers<[1], [0], [0], [1], [0, 0, 1, 1], [], []>} : vector<8x32xf32>, vector<32x128xf32>, vector<8x128xf32> -> vector<8x128xf32>
    %357 = vector.extract_strided_slice %0 {offsets = [5, 0], sizes = [1, 128], strides = [1, 1]} : vector<13x128xf32> to vector<1x128xf32>
    %358 = vector.broadcast %357 : vector<1x128xf32> to vector<8x128xf32>
    %359 = arith.addf %356, %358 : vector<8x128xf32>
    %cst_71 = arith.constant 0.000000e+00 : f32
    %360 = vector.broadcast %cst_71 : f32 to vector<8x128xf32>
    %361 = arith.maximumf %359, %360 : vector<8x128xf32>
    %362 = vector.extract_strided_slice %361 {offsets = [0, 0], sizes = [8, 32], strides = [1, 1]} : vector<8x128xf32> to vector<8x32xf32>
    %363 = vector.extract_strided_slice %351 {offsets = [0, 128], sizes = [32, 128], strides = [1, 1]} : vector<32x1024xf32> to vector<32x128xf32>
    %cst_72 = arith.constant dense<0.000000e+00> : vector<8x128xf32>
    %364 = tpu.matmul %362, %363, %cst_72 {dimension_numbers = #tpu.dot_dimension_numbers<[1], [0], [0], [1], [0, 0, 1, 1], [], []>} : vector<8x32xf32>, vector<32x128xf32>, vector<8x128xf32> -> vector<8x128xf32>
    %365 = vector.extract_strided_slice %0 {offsets = [6, 0], sizes = [1, 128], strides = [1, 1]} : vector<13x128xf32> to vector<1x128xf32>
    %366 = vector.broadcast %365 : vector<1x128xf32> to vector<8x128xf32>
    %367 = arith.addf %364, %366 : vector<8x128xf32>
    %368 = arith.addf %367, %330 : vector<8x128xf32>
    %cst_73 = arith.constant 0.000000e+00 : f32
    %369 = vector.broadcast %cst_73 : f32 to vector<8x128xf32>
    %370 = arith.maximumf %368, %369 : vector<8x128xf32>
    %371 = vector.extract_strided_slice %370 {offsets = [0, 0], sizes = [8, 32], strides = [1, 1]} : vector<8x128xf32> to vector<8x32xf32>
    %372 = vector.extract_strided_slice %351 {offsets = [0, 256], sizes = [32, 128], strides = [1, 1]} : vector<32x1024xf32> to vector<32x128xf32>
    %cst_74 = arith.constant dense<0.000000e+00> : vector<8x128xf32>
    %373 = tpu.matmul %371, %372, %cst_74 {dimension_numbers = #tpu.dot_dimension_numbers<[1], [0], [0], [1], [0, 0, 1, 1], [], []>} : vector<8x32xf32>, vector<32x128xf32>, vector<8x128xf32> -> vector<8x128xf32>
    %374 = vector.extract_strided_slice %0 {offsets = [7, 0], sizes = [1, 128], strides = [1, 1]} : vector<13x128xf32> to vector<1x128xf32>
    %375 = vector.broadcast %374 : vector<1x128xf32> to vector<8x128xf32>
    %376 = arith.addf %373, %375 : vector<8x128xf32>
    %cst_75 = arith.constant 0.000000e+00 : f32
    %377 = vector.broadcast %cst_75 : f32 to vector<8x128xf32>
    %378 = arith.maximumf %376, %377 : vector<8x128xf32>
    %379 = vector.extract_strided_slice %378 {offsets = [0, 0], sizes = [8, 32], strides = [1, 1]} : vector<8x128xf32> to vector<8x32xf32>
    %380 = vector.extract_strided_slice %351 {offsets = [0, 384], sizes = [32, 128], strides = [1, 1]} : vector<32x1024xf32> to vector<32x128xf32>
    %cst_76 = arith.constant dense<0.000000e+00> : vector<8x128xf32>
    %381 = tpu.matmul %379, %380, %cst_76 {dimension_numbers = #tpu.dot_dimension_numbers<[1], [0], [0], [1], [0, 0, 1, 1], [], []>} : vector<8x32xf32>, vector<32x128xf32>, vector<8x128xf32> -> vector<8x128xf32>
    %382 = vector.extract_strided_slice %0 {offsets = [8, 0], sizes = [1, 128], strides = [1, 1]} : vector<13x128xf32> to vector<1x128xf32>
    %383 = vector.broadcast %382 : vector<1x128xf32> to vector<8x128xf32>
    %384 = arith.addf %381, %383 : vector<8x128xf32>
    %385 = arith.addf %384, %368 : vector<8x128xf32>
    %386 = vector.extract_strided_slice %336 {offsets = [0, 0], sizes = [8, 32], strides = [1, 1]} : vector<8x128xf32> to vector<8x32xf32>
    %387 = vector.extract_strided_slice %351 {offsets = [0, 512], sizes = [32, 128], strides = [1, 1]} : vector<32x1024xf32> to vector<32x128xf32>
    %cst_77 = arith.constant dense<0.000000e+00> : vector<8x128xf32>
    %388 = tpu.matmul %386, %387, %cst_77 {dimension_numbers = #tpu.dot_dimension_numbers<[1], [0], [0], [1], [0, 0, 1, 1], [], []>} : vector<8x32xf32>, vector<32x128xf32>, vector<8x128xf32> -> vector<8x128xf32>
    %389 = vector.extract_strided_slice %0 {offsets = [9, 0], sizes = [1, 128], strides = [1, 1]} : vector<13x128xf32> to vector<1x128xf32>
    %390 = vector.broadcast %389 : vector<1x128xf32> to vector<8x128xf32>
    %391 = arith.addf %388, %390 : vector<8x128xf32>
    %cst_78 = arith.constant 0.000000e+00 : f32
    %392 = vector.broadcast %cst_78 : f32 to vector<8x128xf32>
    %393 = arith.maximumf %391, %392 : vector<8x128xf32>
    %394 = vector.extract_strided_slice %385 {offsets = [0, 0], sizes = [8, 32], strides = [1, 1]} : vector<8x128xf32> to vector<8x32xf32>
    %395 = vector.extract_strided_slice %351 {offsets = [0, 640], sizes = [32, 128], strides = [1, 1]} : vector<32x1024xf32> to vector<32x128xf32>
    %cst_79 = arith.constant dense<0.000000e+00> : vector<8x128xf32>
    %396 = tpu.matmul %394, %395, %cst_79 {dimension_numbers = #tpu.dot_dimension_numbers<[1], [0], [0], [1], [0, 0, 1, 1], [], []>} : vector<8x32xf32>, vector<32x128xf32>, vector<8x128xf32> -> vector<8x128xf32>
    %397 = arith.addf %340, %396 : vector<8x128xf32>
    %398 = vector.extract_strided_slice %393 {offsets = [0, 0], sizes = [8, 32], strides = [1, 1]} : vector<8x128xf32> to vector<8x32xf32>
    %399 = vector.extract_strided_slice %351 {offsets = [0, 768], sizes = [32, 128], strides = [1, 1]} : vector<32x1024xf32> to vector<32x128xf32>
    %cst_80 = arith.constant dense<0.000000e+00> : vector<8x128xf32>
    %400 = tpu.matmul %398, %399, %cst_80 {dimension_numbers = #tpu.dot_dimension_numbers<[1], [0], [0], [1], [0, 0, 1, 1], [], []>} : vector<8x32xf32>, vector<32x128xf32>, vector<8x128xf32> -> vector<8x128xf32>
    %401 = arith.addf %397, %400 : vector<8x128xf32>
    %402 = vector.extract_strided_slice %346 {offsets = [0, 0], sizes = [8, 32], strides = [1, 1]} : vector<8x128xf32> to vector<8x32xf32>
    %403 = vector.extract_strided_slice %351 {offsets = [0, 896], sizes = [32, 128], strides = [1, 1]} : vector<32x1024xf32> to vector<32x128xf32>
    %cst_81 = arith.constant dense<0.000000e+00> : vector<8x128xf32>
    %404 = tpu.matmul %402, %403, %cst_81 {dimension_numbers = #tpu.dot_dimension_numbers<[1], [0], [0], [1], [0, 0, 1, 1], [], []>} : vector<8x32xf32>, vector<32x128xf32>, vector<8x128xf32> -> vector<8x128xf32>
    %405 = arith.addf %350, %404 : vector<8x128xf32>
    %406 = vector.extract_strided_slice %0 {offsets = [10, 0], sizes = [1, 128], strides = [1, 1]} : vector<13x128xf32> to vector<1x128xf32>
    %407 = vector.broadcast %406 : vector<1x128xf32> to vector<8x128xf32>
    %408 = arith.addf %405, %407 : vector<8x128xf32>
    %409 = vector.extract_strided_slice %401 {offsets = [0, 0], sizes = [8, 16], strides = [1, 1]} : vector<8x128xf32> to vector<8x16xf32>
    %410 = vector.extract_strided_slice %408 {offsets = [0, 0], sizes = [8, 16], strides = [1, 1]} : vector<8x128xf32> to vector<8x16xf32>
    %411 = vector.extract_strided_slice %0 {offsets = [11, 0], sizes = [1, 128], strides = [1, 1]} : vector<13x128xf32> to vector<1x128xf32>
    %412 = vector.extract_strided_slice %411 {offsets = [0, 0], sizes = [1, 16], strides = [1, 1]} : vector<1x128xf32> to vector<1x16xf32>
    %413 = vector.broadcast %412 : vector<1x16xf32> to vector<8x16xf32>
    %414 = arith.mulf %413, %409 : vector<8x16xf32>
    %415 = vector.extract_strided_slice %0 {offsets = [12, 0], sizes = [1, 128], strides = [1, 1]} : vector<13x128xf32> to vector<1x128xf32>
    %416 = vector.extract_strided_slice %415 {offsets = [0, 0], sizes = [1, 16], strides = [1, 1]} : vector<1x128xf32> to vector<1x16xf32>
    %417 = vector.broadcast %416 : vector<1x16xf32> to vector<8x16xf32>
    %418 = arith.mulf %417, %410 : vector<8x16xf32>
    %419 = arith.addf %414, %418 : vector<8x16xf32>
    %cst_82 = arith.constant dense<0xFF800000> : vector<8xf32>
    %420 = vector.multi_reduction <maximumf>, %419, %cst_82 [1] : vector<8x16xf32> to vector<8xf32>
    %421 = vector.shape_cast %420 : vector<8xf32> to vector<8x1xf32>
    %422 = vector.broadcast %421 : vector<8x1xf32> to vector<8x16xf32>
    %423 = arith.subf %419, %422 : vector<8x16xf32>
    %424 = math.exp %423 : vector<8x16xf32>
    %cst_83 = arith.constant dense<0.000000e+00> : vector<8xf32>
    %425 = vector.multi_reduction <add>, %424, %cst_83 [1] : vector<8x16xf32> to vector<8xf32>
    %426 = vector.shape_cast %425 : vector<8xf32> to vector<8x1xf32>
    %427 = math.log %426 : vector<8x1xf32>
    %428 = vector.broadcast %427 : vector<8x1xf32> to vector<8x16xf32>
    %429 = arith.subf %423, %428 : vector<8x16xf32>
    %cst_84 = arith.constant dense<0xFF800000> : vector<8xf32>
    %430 = vector.multi_reduction <maximumf>, %409, %cst_84 [1] : vector<8x16xf32> to vector<8xf32>
    %431 = vector.shape_cast %430 : vector<8xf32> to vector<8x1xf32>
    %432 = vector.broadcast %431 : vector<8x1xf32> to vector<8x16xf32>
    %433 = arith.subf %409, %432 : vector<8x16xf32>
    %434 = math.exp %433 : vector<8x16xf32>
    %cst_85 = arith.constant dense<0.000000e+00> : vector<8xf32>
    %435 = vector.multi_reduction <add>, %434, %cst_85 [1] : vector<8x16xf32> to vector<8xf32>
    %436 = vector.shape_cast %435 : vector<8xf32> to vector<8x1xf32>
    %437 = math.log %436 : vector<8x1xf32>
    %438 = vector.broadcast %437 : vector<8x1xf32> to vector<8x16xf32>
    %439 = arith.subf %433, %438 : vector<8x16xf32>
    %440 = tpu.concatenate %429, %439 in 1 : vector<8x16xf32>, vector<8x16xf32> -> vector<8x32xf32>
    %c0_86 = arith.constant 0 : index
    %c0_87 = arith.constant 0 : index
    %441 = vector.load %arg6[%c0_86, %c0_87] : memref<8x32xf32, #tpu.memory_space<vmem>>, vector<8x32xf32>
    tpu.vector_store %arg6[%c0_86, %c0_87], %440 {strides = array<i32>} : memref<8x32xf32, #tpu.memory_space<vmem>>, vector<8x32xf32>,
    return
  }
  func.func @transform_0(%arg0: i32) -> (i32, i32) {
    %c0_i32 = arith.constant 0 : i32
    %c0_i32_0 = arith.constant 0 : i32
    return %arg0, %c0_i32 : i32, i32
  }
  func.func @transform_1(%arg0: i32) -> (i32, i32) {
    %c0_i32 = arith.constant 0 : i32
    %c0_i32_0 = arith.constant 0 : i32
    %c0_i32_1 = arith.constant 0 : i32
    return %c0_i32, %c0_i32_0 : i32, i32
  }
  func.func @transform_2(%arg0: i32) -> (i32, i32) {
    %c0_i32 = arith.constant 0 : i32
    %c0_i32_0 = arith.constant 0 : i32
    %c0_i32_1 = arith.constant 0 : i32
    return %c0_i32, %c0_i32_0 : i32, i32
  }
  func.func @transform_3(%arg0: i32) -> (i32, i32) {
    %c0_i32 = arith.constant 0 : i32
    %c0_i32_0 = arith.constant 0 : i32
    %c0_i32_1 = arith.constant 0 : i32
    return %c0_i32, %c0_i32_0 : i32, i32
  }
  func.func @transform_4(%arg0: i32) -> (i32, i32) {
    %c0_i32 = arith.constant 0 : i32
    %c0_i32_0 = arith.constant 0 : i32
    %c0_i32_1 = arith.constant 0 : i32
    return %c0_i32, %c0_i32_0 : i32, i32
  }
  func.func @transform_5(%arg0: i32) -> (i32, i32) {
    %c0_i32 = arith.constant 0 : i32
    %c0_i32_0 = arith.constant 0 : i32
    return %arg0, %c0_i32 : i32, i32
  }
}

</mosaic_0001>

<bundles_post_ra>
// kernel: forward.1
= control target key start
LH: loop header
LB: loop body
LE: loop exit
PB: predicated region body
PF: predicated region fallthrough
CT: control target
= control target key end

     0   :  { %10 = vsyncpa [#allocation3], 0  ;;  %s5039_s0 = inlined_call_operand.vmem [shape: s32[8,8], index: 0, kind: input, shape index: {}]   ;;  %s5040_s1 = inlined_call_operand.hbm [shape: f32[33,384], index: 1, kind: input, shape index: {}]   ;;  %s5041_s2 = inlined_call_operand.hbm [shape: f32[160,640], index: 2, kind: input, shape index: {}]   ;;  %s5042_s3 = inlined_call_operand.hbm [shape: f32[32,1024], index: 3, kind: input, shape index: {}]   ;;  %s5043_s4 = inlined_call_operand.hbm [shape: f32[13,128], index: 4, kind: input, shape index: {}]   ;;  %s5044_s5 = inlined_call_operand.vmem [shape: f32[8,32], index: 5, kind: output, shape index: {}]  }
   0x1   :  { %11 = vsyncpa [#allocation5], 0 }
   0x2   :  { %12 = vsyncpa [#allocation8], 0  ;;  %s4570_s18 = smov [#allocation4]   ;;  %s4476_s22 = scalar_lea.hbm %s5041_s2, 12800 }
   0x3   :  { %s32_s19 = sshll.u32 %s4570_s18, 4  ;;  %p4477_p0 = scmp.ne.s32.totalorder %s5041_s2, %s4476_s22  ;;  %s33_s19 = int_to_ptr.vmem [resolvable:$true] %s32_s19 }
   0x4   :  { %p4480_p1 = scmp.lt.u32.totalorder %s4476_s22, %s5041_s2 }
   0x6   :  { %p4482_p2 = pnand %p4480_p1, %p4477_p0 }
   0x8   :  { %4485 = shalt.err (!%p4482_p2)
}
   0x9   :  { %s4486_s27 = scalar_lea.vmem %s33_s19, 12800  ;;  %p4491_p4 = scmp.lt.s32.totalorder %s33_s19, %s33_s19 }
   0xa   :  { %p4487_p3 = scmp.ne.s32.totalorder %s33_s19, %s4486_s27  ;;  %p4492_p5 = scmp.lt.s32.totalorder %s4486_s27, %s4486_s27 }
   0xc   :  { %p4493_p6 = por %p4492_p5, %p4491_p4 }
   0xe   :  { %p4494_p7 = pnand %p4493_p6, %p4487_p3 }
  0x10   :  { %4497 = shalt.err (!%p4494_p7)
}
  0x11   :  { %s4571_s28 = smov 640   ;;  %s4572_s29 = smov 40  }
  0x12   :  { %38 = dma.hbm_to_vmem [thread:$0]  %s5041_s2, 12800, %s33_s19, [#allocation5], %s4571_s28, %s4571_s28, %s4572_s29  }
  0x13   :  { %s4573_s7 = smov [#allocation2]   ;;  %s4498_s11 = scalar_lea.hbm %s5040_s1, 1920 }
  0x14   :  { %s20_s8 = sshll.u32 %s4573_s7, 4  ;;  %p4499_p8 = scmp.ne.s32.totalorder %s5040_s1, %s4498_s11  ;;  %s21_s8 = int_to_ptr.vmem [resolvable:$true] %s20_s8 }
  0x15   :  { %p4502_p9 = scmp.lt.u32.totalorder %s4498_s11, %s5040_s1 }
  0x17   :  { %p4504_p10 = pnand %p4502_p9, %p4499_p8 }
  0x19   :  { %4507 = shalt.err (!%p4504_p10)
}
  0x1a   :  { %s4508_s16 = scalar_lea.vmem %s21_s8, 1920  ;;  %p4513_p12 = scmp.lt.s32.totalorder %s21_s8, %s21_s8 }
  0x1b   :  { %p4509_p11 = scmp.ne.s32.totalorder %s21_s8, %s4508_s16  ;;  %p4514_p13 = scmp.lt.s32.totalorder %s4508_s16, %s4508_s16 }
  0x1d   :  { %p4515_p0 = por %p4514_p13, %p4513_p12 }
  0x1f   :  { %p4516_p1 = pnand %p4515_p0, %p4509_p11 }
  0x21   :  { %4519 = shalt.err (!%p4516_p1)
}
  0x22   :  { %s4574_s2 = smov 384   ;;  %s4575_s17 = smov 24  }
  0x23   :  { %26 = dma.hbm_to_vmem [thread:$0]  %s5040_s1, 1920, %s21_s8, [#allocation3], %s4574_s2, %s4574_s2, %s4575_s17  }
  0x24   :  { %s4576_s20 = smov [#allocation6]   ;;  %s4520_s24 = scalar_lea.hbm %s5042_s3, 4096 }
  0x25   :  { %s44_s21 = sshll.u32 %s4576_s20, 4  ;;  %p4521_p2 = scmp.ne.s32.totalorder %s5042_s3, %s4520_s24  ;;  %s45_s21 = int_to_ptr.vmem [resolvable:$true] %s44_s21 }
  0x26   :  { %p4524_p3 = scmp.lt.u32.totalorder %s4520_s24, %s5042_s3 }
  0x28   :  { %p4526_p4 = pnand %p4524_p3, %p4521_p2 }
  0x2a   :  { %4529 = shalt.err (!%p4526_p4)
}
  0x2b   :  { %s4530_s29 = scalar_lea.vmem %s45_s21, 4096  ;;  %p4535_p6 = scmp.lt.s32.totalorder %s45_s21, %s45_s21 }
  0x2c   :  { %p4531_p5 = scmp.ne.s32.totalorder %s45_s21, %s4530_s29  ;;  %p4536_p7 = scmp.lt.s32.totalorder %s4530_s29, %s4530_s29 }
  0x2e   :  { %p4537_p8 = por %p4536_p7, %p4535_p6 }
  0x30   :  { %p4538_p9 = pnand %p4537_p8, %p4531_p5 }
  0x32   :  { %4541 = shalt.err (!%p4538_p9)
}
  0x33   :  { %s4577_s1 = smov 1024   ;;  %s4578_s30 = smov 64  }
  0x34   :  { %50 = dma.hbm_to_vmem [thread:$0]  %s5042_s3, 4096, %s45_s21, [#allocation5], %s4577_s1, %s4577_s1, %s4578_s30  }
  0x35   :  { %s4579_s8 = smov [#allocation7]   ;;  %s4542_s12 = scalar_lea.hbm %s5043_s4, 256 }
  0x36   :  { %s56_s9 = sshll.u32 %s4579_s8, 4  ;;  %p4543_p10 = scmp.ne.s32.totalorder %s5043_s4, %s4542_s12  ;;  %s57_s9 = int_to_ptr.vmem [resolvable:$true] %s56_s9 }
  0x37   :  { %p4546_p11 = scmp.lt.u32.totalorder %s4542_s12, %s5043_s4 }
  0x39   :  { %p4548_p12 = pnand %p4546_p11, %p4543_p10 }
  0x3b   :  { %4551 = shalt.err (!%p4548_p12)
}
  0x3c   :  { %s4552_s2 = scalar_lea.vmem %s57_s9, 256  ;;  %p4557_p0 = scmp.lt.s32.totalorder %s57_s9, %s57_s9 }
  0x3d   :  { %p4553_p13 = scmp.ne.s32.totalorder %s57_s9, %s4552_s2  ;;  %p4558_p1 = scmp.lt.s32.totalorder %s4552_s2, %s4552_s2 }
  0x3f   :  { %p4559_p2 = por %p4558_p1, %p4557_p0 }
  0x41   :  { %p4560_p3 = pnand %p4559_p2, %p4553_p13 }
  0x43   :  { %4563 = shalt.err (!%p4560_p3)
}
  0x44   :  { %s4580_s3 = smov 128   ;;  %s4581_s17 = smov 8  }
  0x45   :  { %62 = dma.hbm_to_vmem [thread:$0]  %s5043_s4, 256, %s57_s9, [#allocation8], %s4580_s3, %s4580_s3, %s4581_s17  }
  0x46   :  { %4564 = dma.done.wait [#allocation3], 1920  }
  0x47   :  { %4565 = vsyncadd [#allocation3], 4294965376 }
  0x48   :  { %4566 = dma.done.wait [#allocation5], 16896  }
  0x49   :  { %4567 = vsyncadd [#allocation5], 4294950400 }
  0x4a   :  { %4568 = dma.done.wait [#allocation8], 256  }
  0x4b   :  { %4569 = vsyncadd [#allocation8], 4294967040  ;;  %v4582_v0 = vmov 2   ;;  %v4583_v1 = vmov 0   ;;  %v4584_v2 = vmov 0.0   ;;  %v77_v3 = vld [vmem:[%s5039_s0] sm:$0xff]  ;;  %v78_v23 = vlaneseq }
  0x4c   :  { %4381 = vset.pattern.permute.xlu1 %v4582_v0  ;;  %4379 = vset.pattern.permute.xlu0 %v4583_v1  ;;  %v121_v4 = vld [vmem:[#allocation2 + $0x8] sm:$0xff]  ;;  %v124_v5 = vld [vmem:[#allocation2 + $0x20] sm:$0xff]  ;;  %v123_v8 = vld [vmem:[#allocation2 + $0x18] sm:$0xff]  ;;  %v4585_v16 = vmov 3   ;;  %v4586_v17 = vmov 1   ;;  %v4587_v18 = vmov 0.0|0.0  }
  0x4d   :  { %203 = vmatprep.mubr.f32.mxu1 %v4584_v2  ;;  %359 = vmatprep.mubr.f32.mxu0 %v4584_v2  ;;  %v4683_v6 = vpack.c.bf16 %v124_v5, %v121_v4  ;;  %v120_v7 = vld [vmem:[#allocation2] sm:$0xff]  ;;  %v127_v9 = vld [vmem:[#allocation2 + $0x38] sm:$0xff]  ;;  %v130_v11 = vld [vmem:[#allocation2 + $0x50] sm:$0xff]  ;;  %v4588_v19 = vmov 4   ;;  %v4589_v20 = vmov 5   ;;  %v4590_v21 = vmov 6  }
  0x4e   :  { %91 = vperm.xlu1 %4381, %v77_v3   ;;  %81 = vperm.xlu0 %4379, %v77_v3   ;;  %v4685_v10 = vpack.c.bf16 %v123_v8, %v120_v7  ;;  %v126_v12 = vld [vmem:[#allocation2 + $0x30] sm:$0xff]  ;;  %v129_v13 = vld [vmem:[#allocation2 + $0x48] sm:$0xff]  ;;  %v4688_v14 = vpack.c.bf16 %v130_v11, %v127_v9  ;;  %v4591_v22 = vmov 7   ;;  %v4702_v24 = vand.u32 127, %v78_v23  ;;  %v128_v30 = vld [vmem:[#allocation2 + $0x40] sm:$0xff]  ;;  %s4592_s0 = smov 32  }
  0x4f   :  { %4049 = vmatprep.subr.bf16.mxu1 %v4683_v6  ;;  %v4691_v15 = vpack.c.bf16 %v129_v13, %v126_v12  ;;  %v122_v25 = vld [vmem:[#allocation2 + $0x10] sm:$0xff]  ;;  %v125_v26 = vld [vmem:[#allocation2 + $0x28] sm:$0xff]  ;;  %vm135_vm0 = vcmask 130048   ;;  %v131_v31 = vld [vmem:[#allocation2 + $0x58] sm:$0xff]  ;;  %vm4593_vm3 = vmmov 0   ;;  %s4594_s4 = smov 16  }
  0x50   :  { %4051 = vmatpush1.bf16.msra.mxu1 %v4685_v10  ;;  %4056 = vmatprep.subr.bf16.mxu0 %v4688_v14  ;;  %v4704_v29 = vpack.c.bf16 %v125_v26, %v122_v25  ;;  %v4720_v34 = vpack.c.bf16 %v131_v31, %v128_v30  ;;  %s4595_s22 = smov 48   ;;  %s4596_s23 = smov 80   ;;  %v4767_v47 = vld [vmem:[#allocation2 + $0x60] ss:$0 sm:$0xff]  ;;  %v4769_v48 = vld [vmem:[#allocation2 + $0x68] ss:$0 sm:$0xff] }
  0x51   :  { %4052 = vmatprep.subr.bf16.mxu1 %v4587_v18  ;;  %4058 = vmatpush1.bf16.msra.mxu0 %v4691_v15  ;;  %s4597_s24 = smov 96   ;;  %s4598_s25 = smov 112   ;;  %vm2646_vm10 = vcmask 261120   ;;  %vm2648_vm11 = vcmask 392192   ;;  %vm2650_vm12 = vcmask 523264   ;;  %vm2652_vm13 = vcmask 654336  }
  0x52   :  { %4382 = vset.pattern.permute.xlu1 %v4585_v16  ;;  %4380 = vset.pattern.permute.xlu0 %v4586_v17  ;;  %vm2654_vm14 = vcmask 785408   ;;  %vm2656_vm15 = vcmask 916480  }
  0x53   :  { %96 = vperm.xlu1 %4382, %v77_v3   ;;  %86 = vperm.xlu0 %4380, %v77_v3  }
  0x54   :  { %4063 = vmatprep.subr.bf16.mxu0 %v4683_v6  ;;  %360 = vmatmul.mubr.f32.vlgmr.msra.gmra.mrb[0].mxu0 %v4584_v2 }
  0x55   :  { %4065 = vmatpush1.bf16.msra.mxu0 %v4685_v10  ;;  %524 = vmatprep.mubr.f32.mxu0 %v4584_v2 }
  0x56   :  { %4070 = vmatprep.subr.bf16.mxu0 %v4688_v14 }
  0x57   :  { %4383 = vset.pattern.permute.xlu1 %v4588_v19  ;;  %4384 = vset.pattern.permute.xlu0 %v4589_v20 }
  0x58   :  { %101 = vperm.xlu1 %4383, %v77_v3   ;;  %106 = vperm.xlu0 %4384, %v77_v3  }
  0x5c   :  { %4385 = vset.pattern.permute.xlu1 %v4590_v21  ;;  %4387 = vset.pattern.permute.xlu0 %v4591_v22 }
  0x5d   :  { %111 = vperm.xlu1 %4385, %v77_v3  }
  0x61   :  { %4386 = vset.pattern.permute.xlu1 %v4591_v22 }
  0x62   :  { %116 = vperm.xlu1 %4386, %v77_v3   ;;  %v4773_v3 = vld [vmem:[#allocation2 + $0x70] ss:$0 sm:$0xff] }
  0xcd   :  { %v82_v27 = vpop.permute.xlu0 %81  ;;  %v92_v28 = vpop.permute.xlu1 %91 }
  0xce   :  { %vm83_vm1 = vcmp.eq.s32.totalorder %v82_v27, %v4702_v24  ;;  %vm93_vm2 = vcmp.eq.s32.totalorder %v92_v28, %v4702_v24 }
  0xcf   :  { %v4709_v32 = vsel %vm83_vm1, 1.0, %v4584_v2  ;;  %v4712_v33 = vsel %vm93_vm2, 1.0, %v4584_v2 }
  0xd0   :  { %3700 = vmatmul.mubr.msk.f32.vlgmr.msra.gmra.mrb[0].mxu1 %vm135_vm0, %v4709_v32  ;;  %2627 = vrot.lane.b32.xlu1 %v4712_v33, %s4592_s0 }
  0xd1   :  { %4054 = vmatpush3.bf16.msra.mxu1 %v4704_v29  ;;  %3852 = vmatprep.mubr.msk.f32.mxu1 %vm4593_vm3, %v4584_v2 }
  0xd2   :  { %v87_v35 = vpop.permute.xlu0 %86  ;;  %v97_v36 = vpop.permute.xlu1 %96  ;;  %4059 = vmatprep.subr.bf16.mxu1 %v4587_v18 }
  0xd3   :  { %vm88_vm4 = vcmp.eq.s32.totalorder %v87_v35, %v4702_v24  ;;  %vm98_vm5 = vcmp.eq.s32.totalorder %v97_v36, %v4702_v24 }
  0xd4   :  { %v89_v37 = vsel %vm88_vm4, 1.0, %v4584_v2  ;;  %3853 = vmatmul.mubr.msk.f32.vlgmr.msra.gmra.mrb[2].mxu1 %vm135_vm0, %v4709_v32  ;;  %v4731_v38 = vsel %vm98_vm5, 1.0, %v4584_v2 }
  0xd5   :  { %2624 = vrot.lane.b32.xlu0 %v89_v37, %s4594_s4  ;;  %4061 = vmatpush3.bf16.msra.mxu1 %v4720_v34 }
  0xd6   :  { %3859 = vmatprep.mubr.msk.f32.mxu1 %vm4593_vm3, %v4584_v2  ;;  %4066 = vmatprep.subr.bf16.mxu1 %v4587_v18 }
  0xd7   :  { %v102_v39 = vpop.permute.xlu1 %101  ;;  %v107_v40 = vpop.permute.xlu0 %106  ;;  %3707 = vmatmul.mubr.msk.f32.vlgmr.msra.gmra.mrb[2].mxu0 %vm135_vm0, %v89_v37 }
  0xd8   :  { %vm103_vm6 = vcmp.eq.s32.totalorder %v102_v39, %v4702_v24  ;;  %vm108_vm7 = vcmp.eq.s32.totalorder %v107_v40, %v4702_v24  ;;  %3860 = vmatmul.mubr.f32.vlgmr.msra.gmra.mrb[4].mxu1 %v4584_v2  ;;  %4072 = vmatpush1.bf16.msra.mxu0 %v4691_v15 }
  0xd9   :  { %v4742_v41 = vsel %vm103_vm6, 1.0, %v4584_v2  ;;  %2630 = vrot.lane.b32.xlu0 %v4731_v38, %s4595_s22  ;;  %4068 = vmatpush3.bf16.msra.mxu1 %v4704_v29  ;;  %v4749_v42 = vsel %vm108_vm7, 1.0, %v4584_v2 }
  0xda   :  { %2633 = vrot.lane.b32.xlu1 %v4742_v41, %s4578_s30  ;;  %3866 = vmatprep.mubr.msk.f32.mxu1 %vm4593_vm3, %v4584_v2 }
  0xdb   :  { %4073 = vmatprep.subr.bf16.mxu1 %v4587_v18  ;;  %668 = vmatprep.mubr.f32.mxu0 %v4584_v2 }
  0xdc   :  { %v112_v43 = vpop.permute.xlu1 %111  ;;  %3867 = vmatmul.mubr.msk.f32.vlgmr.msra.gmra.mrb[6].mxu1 %vm135_vm0, %v89_v37  ;;  %4077 = vmatprep.subr.bf16.mxu0 %v4683_v6 }
  0xdd   :  { %2636 = vrot.lane.b32.xlu0 %v4749_v42, %s4596_s23  ;;  %vm113_vm8 = vcmp.eq.s32.totalorder %v112_v43, %v4702_v24  ;;  %4075 = vmatpush3.bf16.msra.mxu1 %v4720_v34 }
  0xde   :  { %v4761_v44 = vsel %vm113_vm8, 1.0, %v4584_v2  ;;  %3873 = vmatprep.mubr.msk.f32.mxu1 %vm4593_vm3, %v4584_v2  ;;  %4080 = vmatprep.subr.bf16.mxu1 %v4587_v18 }
  0xe1   :  { %2639 = vrot.lane.b32.xlu0 %v4761_v44, %s4597_s24 }
 0x127   :  { %v361_v45 = vpop.f32.mrb[0].mxu0 }
 0x128   :  { %v363_v46 = vpop.f32.mrb[1].mxu0 }
 0x1a3   :  { %v205_v49 = vpop.f32.mrb[0].mxu1 }
 0x1a4   :  { %v4318_v50 = vadd.f32 %v4767_v47, %v205_v49  ;;  %v207_v51 = vpop.f32.mrb[1].mxu1 }
 0x1a5   :  { %v4320_v52 = vadd.f32 %v4769_v48, %v207_v51 }
 0x1a6   :  { %v4319_v53 = vadd.f32 %v4318_v50, %v361_v45 }
 0x1a7   :  { %v4321_v54 = vadd.f32 %v4320_v52, %v363_v46  ;;  %v276_v55 = vpop.f32.mrb[2].mxu1 }
 0x1a8   :  { %v3705_v56 = vmul.f32 -1.442695, %v4319_v53  ;;  %v3854_v57 = vpop.f32.mrb[3].mxu1 }
 0x1a9   :  { %v3706_v60 = vmul.f32 -1.442695, %v4321_v54 }
 0x1aa   :  { %4388 = vpow2.f32 %v3705_v56 }
 0x1ab   :  { %v432_v58 = vpop.f32.mrb[4].mxu1  ;;  %4390 = vpow2.f32 %v3706_v60 }
 0x1ac   :  { %v3861_v59 = vpop.f32.mrb[5].mxu1  ;;  %v433_v5 = vadd.f32 %v4773_v3, %v432_v58 }
 0x1af   :  { %v597_v61 = vpop.f32.mrb[6].mxu1 }
 0x1b0   :  { %v3868_v62 = vpop.f32.mrb[7].mxu1 }
 0x1b4   :  { %v4389_v63 = vpop.eup %4388 }
 0x1b5   :  { %v440_v0 = vadd.f32 1.0, %v4389_v63  ;;  %v4391_v1 = vpop.eup %4390 }
 0x1b6   :  { %v447_v4 = vadd.f32 1.0, %v4391_v1 }
 0x1b7   :  { %4392 = vrcp.f32 %v440_v0 }
 0x1b8   :  { %4394 = vrcp.f32 %v447_v4 }
 0x1c1   :  { %v4393_v7 = vpop.eup %4392 }
 0x1c2   :  { %v450_v8 = vmul.f32 %v4393_v7, %v433_v5  ;;  %v4395_v11 = vpop.eup %4394 }
 0x1c3   :  { %v453_v12 = vsub.f32 1.0, %v4395_v11  ;;  %v455_v17 = vmul.f32 0.0, %v4395_v11 }
 0x1c4   :  { %v451_v9 = vadd.f32 %v450_v8, %v276_v55 }
 0x1c6   :  { %4396 = vtanh.f32 %v451_v9 }
 0x1d0   :  { %v4397_v13 = vpop.eup %4396 }
 0x1d1   :  { %v454_v16 = vmul.f32 %v4397_v13, %v453_v12 }
 0x1d3   :  { %v456_v19 = vadd.f32 %v455_v17, %v454_v16 }
 0x1d5   :  { %3709 = vmatmul.mubr.msk.f32.vlgmr.msra.gmra.mrb[2].mxu0 %vm135_vm0, %v456_v19  ;;  %3874 = vmatmul.mubr.msk.f32.vlgmr.msra.gmra.mrb[8].mxu1 %vm135_vm0, %v456_v19 }
 0x1d6   :  { %4079 = vmatpush1.bf16.msra.mxu0 %v4685_v10  ;;  %4082 = vmatpush3.bf16.msra.mxu1 %v4704_v29 }
 0x1d7   :  { %3880 = vmatprep.mubr.msk.f32.mxu1 %vm4593_vm3, %v4584_v2  ;;  %833 = vmatprep.mubr.f32.mxu0 %v4584_v2 }
 0x1d8   :  { %4084 = vmatprep.subr.bf16.mxu0 %v4688_v14  ;;  %4087 = vmatprep.subr.bf16.mxu1 %v4587_v18 }
 0x1d9   :  { %3881 = vmatmul.mubr.msk.f32.vlgmr.msra.gmra.mrb[10].mxu1 %vm135_vm0, %v4712_v33  ;;  %3713 = vmatmul.mubr.msk.f32.vlgmr.msra.gmra.mrb[4].mxu0 %vm135_vm0, %v4712_v33 }
 0x1da   :  { %4086 = vmatpush1.bf16.msra.mxu0 %v4691_v15  ;;  %4089 = vmatpush3.bf16.msra.mxu1 %v4720_v34 }
 0x1db   :  { %977 = vmatprep.mubr.f32.mxu0 %v4584_v2  ;;  %3887 = vmatprep.mubr.msk.f32.mxu1 %vm4593_vm3, %v4584_v2 }
 0x1dc   :  { %4091 = vmatprep.subr.bf16.mxu0 %v4683_v6  ;;  %4094 = vmatprep.subr.bf16.mxu1 %v4587_v18 }
 0x2a8   :  { %v670_v20 = vpop.f32.mrb[2].mxu0  ;;  %v741_v21 = vpop.f32.mrb[8].mxu1 }
 0x2a9   :  { %v671_v22 = vadd.f32 %v4767_v47, %v670_v20  ;;  %v672_v25 = vpop.f32.mrb[3].mxu0  ;;  %v3875_v26 = vpop.f32.mrb[9].mxu1  ;;  %v742_v40 = vadd.f32 %v4773_v3, %v741_v21 }
 0x2aa   :  { %v673_v28 = vadd.f32 %v4769_v48, %v672_v25 }
 0x2ab   :  { %v3711_v27 = vmul.f32 -1.442695, %v671_v22 }
 0x2ac   :  { %v906_v30 = vpop.f32.mrb[10].mxu1  ;;  %v3712_v33 = vmul.f32 -1.442695, %v673_v28 }
 0x2ad   :  { %4398 = vpow2.f32 %v3711_v27  ;;  %v3882_v31 = vpop.f32.mrb[11].mxu1 }
 0x2ae   :  { %4400 = vpow2.f32 %v3712_v33 }
 0x2b7   :  { %v4399_v35 = vpop.eup %4398 }
 0x2b8   :  { %v749_v36 = vadd.f32 1.0, %v4399_v35  ;;  %v4401_v37 = vpop.eup %4400 }
 0x2b9   :  { %v756_v39 = vadd.f32 1.0, %v4401_v37 }
 0x2ba   :  { %4402 = vrcp.f32 %v749_v36 }
 0x2bb   :  { %4404 = vrcp.f32 %v756_v39 }
 0x2c4   :  { %v4403_v43 = vpop.eup %4402 }
 0x2c5   :  { %v759_v45 = vmul.f32 %v4403_v43, %v742_v40  ;;  %v4405_v49 = vpop.eup %4404 }
 0x2c6   :  { %v762_v50 = vsub.f32 1.0, %v4405_v49  ;;  %v764_v53 = vmul.f32 %v4405_v49, %v456_v19 }
 0x2c7   :  { %v760_v46 = vadd.f32 %v759_v45, %v597_v61 }
 0x2c9   :  { %4406 = vtanh.f32 %v760_v46 }
 0x2d3   :  { %v4407_v51 = vpop.eup %4406 }
 0x2d4   :  { %v763_v52 = vmul.f32 %v4407_v51, %v762_v50 }
 0x2d6   :  { %v765_v54 = vadd.f32 %v764_v53, %v763_v52 }
 0x2d8   :  { %3715 = vmatmul.mubr.msk.f32.vlgmr.msra.gmra.mrb[4].mxu0 %vm135_vm0, %v765_v54  ;;  %3888 = vmatmul.mubr.msk.f32.vlgmr.msra.gmra.mrb[12].mxu1 %vm135_vm0, %v765_v54 }
 0x2d9   :  { %4093 = vmatpush1.bf16.msra.mxu0 %v4685_v10  ;;  %4096 = vmatpush3.bf16.msra.mxu1 %v4704_v29 }
 0x2da   :  { %3894 = vmatprep.mubr.msk.f32.mxu1 %vm4593_vm3, %v4584_v2  ;;  %1142 = vmatprep.mubr.f32.mxu0 %v4584_v2 }
 0x2db   :  { %4098 = vmatprep.subr.bf16.mxu0 %v4688_v14  ;;  %4101 = vmatprep.subr.bf16.mxu1 %v4587_v18 }
 0x2dc   :  { %3895 = vmatmul.mubr.msk.f32.vlgmr.msra.gmra.mrb[14].mxu1 %vm135_vm0, %v4731_v38  ;;  %3719 = vmatmul.mubr.msk.f32.vlgmr.msra.gmra.mrb[6].mxu0 %vm135_vm0, %v4731_v38 }
 0x2dd   :  { %4100 = vmatpush1.bf16.msra.mxu0 %v4691_v15  ;;  %4103 = vmatpush3.bf16.msra.mxu1 %v4720_v34 }
 0x2de   :  { %1286 = vmatprep.mubr.f32.mxu0 %v4584_v2  ;;  %3901 = vmatprep.mubr.msk.f32.mxu1 %vm4593_vm3, %v4584_v2 }
 0x2df   :  { %4105 = vmatprep.subr.bf16.mxu0 %v4683_v6  ;;  %4108 = vmatprep.subr.bf16.mxu1 %v4587_v18 }
 0x3ab   :  { %v979_v55 = vpop.f32.mrb[4].mxu0  ;;  %v1050_v56 = vpop.f32.mrb[12].mxu1 }
 0x3ac   :  { %v980_v57 = vadd.f32 %v4767_v47, %v979_v55  ;;  %v981_v58 = vpop.f32.mrb[5].mxu0  ;;  %v3889_v59 = vpop.f32.mrb[13].mxu1  ;;  %v1051_v7 = vadd.f32 %v4773_v3, %v1050_v56 }
 0x3ad   :  { %v982_v60 = vadd.f32 %v4769_v48, %v981_v58 }
 0x3ae   :  { %v3717_v38 = vmul.f32 -1.442695, %v980_v57 }
 0x3af   :  { %v1215_v61 = vpop.f32.mrb[14].mxu1  ;;  %v3718_v63 = vmul.f32 -1.442695, %v982_v60 }
 0x3b0   :  { %4408 = vpow2.f32 %v3717_v38  ;;  %v3896_v62 = vpop.f32.mrb[15].mxu1 }
 0x3b1   :  { %4410 = vpow2.f32 %v3718_v63 }
 0x3ba   :  { %v4409_v0 = vpop.eup %4408 }
 0x3bb   :  { %v1058_v1 = vadd.f32 1.0, %v4409_v0  ;;  %v4411_v4 = vpop.eup %4410 }
 0x3bc   :  { %v1065_v5 = vadd.f32 1.0, %v4411_v4 }
 0x3bd   :  { %4412 = vrcp.f32 %v1058_v1 }
 0x3be   :  { %4414 = vrcp.f32 %v1065_v5 }
 0x3c7   :  { %v4413_v8 = vpop.eup %4412 }
 0x3c8   :  { %v1068_v9 = vmul.f32 %v4413_v8, %v1051_v7  ;;  %v4415_v12 = vpop.eup %4414 }
 0x3c9   :  { %v1071_v13 = vsub.f32 1.0, %v4415_v12  ;;  %v1073_v19 = vmul.f32 %v4415_v12, %v765_v54  ;;  %v117_v54 = vpop.permute.xlu1 %116 }
 0x3ca   :  { %v1069_v11 = vadd.f32 %v1068_v9, %v906_v30  ;;  %vm118_vm9 = vcmp.eq.s32.totalorder %v117_v54, %v4702_v24 }
 0x3cb   :  { %v4849_v56 = vsel %vm118_vm9, 1.0, %v4584_v2 }
 0x3cc   :  { %4416 = vtanh.f32 %v1069_v11 }
 0x3d6   :  { %v4417_v16 = vpop.eup %4416 }
 0x3d7   :  { %v1072_v17 = vmul.f32 %v4417_v16, %v1071_v13 }
 0x3d9   :  { %v1074_v20 = vadd.f32 %v1073_v19, %v1072_v17 }
 0x3db   :  { %3721 = vmatmul.mubr.msk.f32.vlgmr.msra.gmra.mrb[6].mxu0 %vm135_vm0, %v1074_v20  ;;  %3902 = vmatmul.mubr.msk.f32.vlgmr.msra.gmra.mrb[16].mxu1 %vm135_vm0, %v1074_v20 }
 0x3dc   :  { %4107 = vmatpush1.bf16.msra.mxu0 %v4685_v10  ;;  %4110 = vmatpush3.bf16.msra.mxu1 %v4704_v29 }
 0x3dd   :  { %3908 = vmatprep.mubr.msk.f32.mxu1 %vm4593_vm3, %v4584_v2  ;;  %1451 = vmatprep.mubr.f32.mxu0 %v4584_v2 }
 0x3de   :  { %4112 = vmatprep.subr.bf16.mxu0 %v4688_v14  ;;  %4115 = vmatprep.subr.bf16.mxu1 %v4587_v18 }
 0x3df   :  { %3909 = vmatmul.mubr.msk.f32.vlgmr.msra.gmra.mrb[18].mxu1 %vm135_vm0, %v4742_v41  ;;  %3725 = vmatmul.mubr.msk.f32.vlgmr.msra.gmra.mrb[8].mxu0 %vm135_vm0, %v4742_v41 }
 0x3e0   :  { %4114 = vmatpush1.bf16.msra.mxu0 %v4691_v15  ;;  %4117 = vmatpush3.bf16.msra.mxu1 %v4720_v34 }
 0x3e1   :  { %1595 = vmatprep.mubr.f32.mxu0 %v4584_v2  ;;  %3915 = vmatprep.mubr.msk.f32.mxu1 %vm4593_vm3, %v4584_v2 }
 0x3e2   :  { %4119 = vmatprep.subr.bf16.mxu0 %v4683_v6  ;;  %4122 = vmatprep.subr.bf16.mxu1 %v4587_v18 }
 0x4ae   :  { %v1288_v21 = vpop.f32.mrb[6].mxu0  ;;  %v1359_v22 = vpop.f32.mrb[16].mxu1 }
 0x4af   :  { %v1289_v25 = vadd.f32 %v4767_v47, %v1288_v21  ;;  %v1290_v26 = vpop.f32.mrb[7].mxu0  ;;  %v3903_v27 = vpop.f32.mrb[17].mxu1  ;;  %v1360_v37 = vadd.f32 %v4773_v3, %v1359_v22 }
 0x4b0   :  { %v1291_v28 = vadd.f32 %v4769_v48, %v1290_v26 }
 0x4b1   :  { %v3723_v41 = vmul.f32 -1.442695, %v1289_v25 }
 0x4b2   :  { %v3724_v30 = vmul.f32 -1.442695, %v1291_v28  ;;  %v1524_v46 = vpop.f32.mrb[18].mxu1 }
 0x4b3   :  { %4418 = vpow2.f32 %v3723_v41  ;;  %v3910_v49 = vpop.f32.mrb[19].mxu1 }
 0x4b4   :  { %4420 = vpow2.f32 %v3724_v30 }
 0x4bd   :  { %v4419_v31 = vpop.eup %4418 }
 0x4be   :  { %v1367_v33 = vadd.f32 1.0, %v4419_v31  ;;  %v4421_v35 = vpop.eup %4420 }
 0x4bf   :  { %v1374_v36 = vadd.f32 1.0, %v4421_v35 }
 0x4c0   :  { %4422 = vrcp.f32 %v1367_v33 }
 0x4c1   :  { %4424 = vrcp.f32 %v1374_v36 }
 0x4ca   :  { %v4423_v39 = vpop.eup %4422 }
 0x4cb   :  { %v1377_v40 = vmul.f32 %v4423_v39, %v1360_v37  ;;  %v4425_v45 = vpop.eup %4424 }
 0x4cc   :  { %v1380_v50 = vsub.f32 1.0, %v4425_v45  ;;  %v1382_v53 = vmul.f32 %v4425_v45, %v1074_v20 }
 0x4cd   :  { %v1378_v43 = vadd.f32 %v1377_v40, %v1215_v61 }
 0x4cf   :  { %4426 = vtanh.f32 %v1378_v43 }
 0x4d9   :  { %v4427_v51 = vpop.eup %4426 }
 0x4da   :  { %v1381_v52 = vmul.f32 %v4427_v51, %v1380_v50 }
 0x4dc   :  { %v1383_v55 = vadd.f32 %v1382_v53, %v1381_v52 }
 0x4de   :  { %2620 = vrot.lane.b32.xlu1 %v1383_v55, %s4594_s4  ;;  %3727 = vmatmul.mubr.msk.f32.vlgmr.msra.gmra.mrb[8].mxu0 %vm135_vm0, %v1383_v55 }
 0x4df   :  { %3916 = vmatmul.mubr.msk.f32.vlgmr.msra.gmra.mrb[20].mxu1 %vm135_vm0, %v1383_v55  ;;  %4121 = vmatpush1.bf16.msra.mxu0 %v4685_v10 }
 0x4e0   :  { %4124 = vmatpush3.bf16.msra.mxu1 %v4704_v29  ;;  %3922 = vmatprep.mubr.msk.f32.mxu1 %vm4593_vm3, %v4584_v2 }
 0x4e1   :  { %1760 = vmatprep.mubr.f32.mxu0 %v4584_v2  ;;  %4126 = vmatprep.subr.bf16.mxu0 %v4688_v14 }
 0x4e2   :  { %2642 = vrot.lane.b32.xlu1 %v4849_v56, %s4598_s25  ;;  %3731 = vmatmul.mubr.msk.f32.vlgmr.msra.gmra.mrb[10].mxu0 %vm135_vm0, %v4749_v42 }
 0x4e3   :  { %3923 = vmatmul.mubr.msk.f32.vlgmr.msra.gmra.mrb[22].mxu1 %vm135_vm0, %v4749_v42  ;;  %4128 = vmatpush1.bf16.msra.mxu0 %v4691_v15 }
 0x4e4   :  { %4129 = vmatprep.subr.bf16.mxu1 %v4587_v18  ;;  %1904 = vmatprep.mubr.f32.mxu0 %v4584_v2 }
 0x4e5   :  { %4131 = vmatpush3.bf16.msra.mxu1 %v4720_v34  ;;  %3929 = vmatprep.mubr.msk.f32.mxu1 %vm4593_vm3, %v4584_v2 }
 0x4e6   :  { %4133 = vmatprep.subr.bf16.mxu0 %v4683_v6  ;;  %4136 = vmatprep.subr.bf16.mxu1 %v4587_v18 }
 0x5b1   :  { %v1597_v24 = vpop.f32.mrb[8].mxu0 }
 0x5b2   :  { %v1598_v57 = vadd.f32 %v4767_v47, %v1597_v24  ;;  %v1668_v58 = vpop.f32.mrb[20].mxu1  ;;  %v1599_v42 = vpop.f32.mrb[9].mxu0 }
 0x5b3   :  { %v3917_v59 = vpop.f32.mrb[21].mxu1  ;;  %v1600_v60 = vadd.f32 %v4769_v48, %v1599_v42  ;;  %v1669_v7 = vadd.f32 %v4773_v3, %v1668_v58 }
 0x5b4   :  { %v3729_v38 = vmul.f32 -1.442695, %v1598_v57 }
 0x5b5   :  { %v3730_v63 = vmul.f32 -1.442695, %v1600_v60 }
 0x5b6   :  { %4428 = vpow2.f32 %v3729_v38  ;;  %v1833_v61 = vpop.f32.mrb[22].mxu1 }
 0x5b7   :  { %v3924_v62 = vpop.f32.mrb[23].mxu1  ;;  %4430 = vpow2.f32 %v3730_v63 }
 0x5c0   :  { %v4429_v0 = vpop.eup %4428 }
 0x5c1   :  { %v1676_v1 = vadd.f32 1.0, %v4429_v0  ;;  %v4431_v4 = vpop.eup %4430 }
 0x5c2   :  { %v1683_v5 = vadd.f32 1.0, %v4431_v4 }
 0x5c3   :  { %4432 = vrcp.f32 %v1676_v1 }
 0x5c4   :  { %4434 = vrcp.f32 %v1683_v5 }
 0x5cd   :  { %v4433_v8 = vpop.eup %4432 }
 0x5ce   :  { %v1686_v9 = vmul.f32 %v4433_v8, %v1669_v7  ;;  %v4435_v12 = vpop.eup %4434  ;;  %v2659_v8 = vld [vmem:[#allocation4 + $0x8] sm:$0xff] }
 0x5cf   :  { %v1689_v13 = vsub.f32 1.0, %v4435_v12  ;;  %v1691_v19 = vmul.f32 %v4435_v12, %v1383_v55  ;;  %v2658_v12 = vld [vmem:[#allocation4] sm:$0xff] }
 0x5d0   :  { %v1687_v11 = vadd.f32 %v1686_v9, %v1524_v46  ;;  %v2664_v9 = vld [vmem:[#allocation4 + $0x30] sm:$0xff] }
 0x5d2   :  { %4436 = vtanh.f32 %v1687_v11  ;;  %v4160_v11 = vpack.c.bf16 %v2664_v9, %v2659_v8  ;;  %v2706_v8 = vld [vmem:[#allocation4 + $0x180] sm:$0xff]  ;;  %v2700_v9 = vld [vmem:[#allocation4 + $0x150] sm:$0xff] }
 0x5dc   :  { %v4437_v16 = vpop.eup %4436 }
 0x5dd   :  { %v1690_v17 = vmul.f32 %v4437_v16, %v1689_v13  ;;  %v2663_v13 = vld [vmem:[#allocation4 + $0x28] sm:$0xff]  ;;  %v2661_v16 = vld [vmem:[#allocation4 + $0x18] sm:$0xff] }
 0x5df   :  { %v1692_v20 = vadd.f32 %v1691_v19, %v1690_v17  ;;  %v4162_v17 = vpack.c.bf16 %v2663_v13, %v2658_v12  ;;  %v2666_v19 = vld [vmem:[#allocation4 + $0x40] sm:$0xff] }
 0x5e1   :  { %3733 = vmatmul.mubr.msk.f32.vlgmr.msra.gmra.mrb[10].mxu0 %vm135_vm0, %v1692_v20  ;;  %3930 = vmatmul.mubr.msk.f32.vlgmr.msra.gmra.mrb[24].mxu1 %vm135_vm0, %v1692_v20 }
 0x5e2   :  { %4135 = vmatpush1.bf16.msra.mxu0 %v4685_v10  ;;  %4138 = vmatpush3.bf16.msra.mxu1 %v4704_v29 }
 0x5e3   :  { %3936 = vmatprep.mubr.msk.f32.mxu1 %vm4593_vm3, %v4584_v2  ;;  %2069 = vmatprep.mubr.f32.mxu0 %v4584_v2 }
 0x5e4   :  { %4140 = vmatprep.subr.bf16.mxu0 %v4688_v14  ;;  %4143 = vmatprep.subr.bf16.mxu1 %v4587_v18 }
 0x5e5   :  { %3937 = vmatmul.mubr.msk.f32.vlgmr.msra.gmra.mrb[26].mxu1 %vm135_vm0, %v4761_v44  ;;  %3737 = vmatmul.mubr.msk.f32.vlgmr.msra.gmra.mrb[12].mxu0 %vm135_vm0, %v4761_v44 }
 0x5e6   :  { %4142 = vmatpush1.bf16.msra.mxu0 %v4691_v15  ;;  %4145 = vmatpush3.bf16.msra.mxu1 %v4720_v34 }
 0x5e7   :  { %2213 = vmatprep.mubr.f32.mxu0 %v4584_v2  ;;  %3943 = vmatprep.mubr.msk.f32.mxu1 %vm4593_vm3, %v4584_v2 }
 0x5e8   :  { %4147 = vmatprep.subr.bf16.mxu0 %v4683_v6  ;;  %4150 = vmatprep.subr.bf16.mxu1 %v4587_v18 }
 0x6b4   :  { %v1906_v21 = vpop.f32.mrb[10].mxu0  ;;  %v1977_v22 = vpop.f32.mrb[24].mxu1 }
 0x6b5   :  { %v1907_v25 = vadd.f32 %v4767_v47, %v1906_v21  ;;  %v1908_v26 = vpop.f32.mrb[11].mxu0  ;;  %v3931_v27 = vpop.f32.mrb[25].mxu1  ;;  %v1978_v37 = vadd.f32 %v4773_v3, %v1977_v22  ;;  %v2665_v21 = vld [vmem:[#allocation4 + $0x38] sm:$0xff]  ;;  %v4200_v22 = vpack.c.bf16 %v2666_v19, %v2661_v16 }
 0x6b6   :  { %v1909_v41 = vadd.f32 %v4769_v48, %v1908_v26  ;;  %v2669_v26 = vld [vmem:[#allocation4 + $0x58] sm:$0xff]  ;;  %v2674_v27 = vld [vmem:[#allocation4 + $0x80] sm:$0xff] }
 0x6b7   :  { %v3735_v44 = vmul.f32 -1.442695, %v1907_v25  ;;  %v2709_v16 = vld [vmem:[#allocation4 + $0x198] sm:$0xff] }
 0x6b8   :  { %v2142_v28 = vpop.f32.mrb[26].mxu1  ;;  %v3736_v31 = vmul.f32 -1.442695, %v1909_v41  ;;  %v2668_v41 = vld [vmem:[#allocation4 + $0x50] sm:$0xff] }
 0x6b9   :  { %4438 = vpow2.f32 %v3735_v44  ;;  %v3938_v30 = vpop.f32.mrb[27].mxu1  ;;  %v4164_v44 = vpack.c.bf16 %v2674_v27, %v2669_v26  ;;  %v2716_v26 = vld [vmem:[#allocation4 + $0x1d0] sm:$0xff]  ;;  %v2710_v27 = vld [vmem:[#allocation4 + $0x1a0] sm:$0xff] }
 0x6ba   :  { %4440 = vpow2.f32 %v3736_v31  ;;  %v2671_v30 = vld [vmem:[#allocation4 + $0x68] sm:$0xff] }
 0x6c3   :  { %v4439_v33 = vpop.eup %4438 }
 0x6c4   :  { %v1985_v35 = vadd.f32 1.0, %v4439_v33  ;;  %v4441_v6 = vpop.eup %4440  ;;  %v2676_v33 = vld [vmem:[#allocation4 + $0x90] sm:$0xff] }
 0x6c5   :  { %v1992_v36 = vadd.f32 1.0, %v4441_v6  ;;  %v2675_v6 = vld [vmem:[#allocation4 + $0x88] sm:$0xff] }
 0x6c6   :  { %4442 = vrcp.f32 %v1985_v35  ;;  %v2670_v35 = vld [vmem:[#allocation4 + $0x60] sm:$0xff] }
 0x6c7   :  { %4444 = vrcp.f32 %v1992_v36  ;;  %v4204_v36 = vpack.c.bf16 %v2676_v33, %v2671_v30  ;;  %v2719_v30 = vld [vmem:[#allocation4 + $0x1e8] sm:$0xff] }
 0x6d0   :  { %v4443_v39 = vpop.eup %4442 }
 0x6d1   :  { %v1995_v40 = vmul.f32 %v4443_v39, %v1978_v37  ;;  %v4445_v45 = vpop.eup %4444  ;;  %v4206_v37 = vpack.c.bf16 %v2675_v6, %v2670_v35  ;;  %v2679_v39 = vld [vmem:[#allocation4 + $0xa8] sm:$0xff]  ;;  %v2718_v35 = vld [vmem:[#allocation4 + $0x1e0] sm:$0xff] }
 0x6d2   :  { %v1998_v46 = vsub.f32 1.0, %v4445_v45  ;;  %v2000_v51 = vmul.f32 %v4445_v45, %v1692_v20  ;;  %v2660_v20 = vld [vmem:[#allocation4 + $0x10] sm:$0xff]  ;;  %v2678_v45 = vld [vmem:[#allocation4 + $0xa0] sm:$0xff]  ;;  %v2723_v6 = vld [vmem:[#allocation4 + $0x208] sm:$0xff] }
 0x6d3   :  { %v1996_v43 = vadd.f32 %v1995_v40, %v1833_v61  ;;  %v4202_v25 = vpack.c.bf16 %v2665_v21, %v2660_v20  ;;  %v2684_v40 = vld [vmem:[#allocation4 + $0xd0] sm:$0xff]  ;;  %v2713_v21 = vld [vmem:[#allocation4 + $0x1b8] sm:$0xff] }
 0x6d4   :  { %v2708_v20 = vld [vmem:[#allocation4 + $0x190] sm:$0xff] }
 0x6d5   :  { %4446 = vtanh.f32 %v1996_v43  ;;  %v4168_v43 = vpack.c.bf16 %v2684_v40, %v2679_v39  ;;  %v2726_v39 = vld [vmem:[#allocation4 + $0x220] sm:$0xff]  ;;  %v2720_v40 = vld [vmem:[#allocation4 + $0x1f0] sm:$0xff] }
 0x6df   :  { %v4447_v49 = vpop.eup %4446 }
 0x6e0   :  { %v1999_v50 = vmul.f32 %v4447_v49, %v1998_v46  ;;  %v2683_v46 = vld [vmem:[#allocation4 + $0xc8] sm:$0xff]  ;;  %v2681_v49 = vld [vmem:[#allocation4 + $0xb8] sm:$0xff] }
 0x6e2   :  { %v2001_v52 = vadd.f32 %v2000_v51, %v1999_v50  ;;  %v4170_v50 = vpack.c.bf16 %v2683_v46, %v2678_v45  ;;  %v2686_v51 = vld [vmem:[#allocation4 + $0xe0] sm:$0xff] }
 0x6e4   :  { %3739 = vmatmul.mubr.msk.f32.vlgmr.msra.gmra.mrb[12].mxu0 %vm135_vm0, %v2001_v52  ;;  %3944 = vmatmul.mubr.msk.f32.vlgmr.msra.gmra.mrb[28].mxu1 %vm135_vm0, %v2001_v52 }
 0x6e5   :  { %4149 = vmatpush1.bf16.msra.mxu0 %v4685_v10  ;;  %4152 = vmatpush3.bf16.msra.mxu1 %v4704_v29 }
 0x6e6   :  { %3950 = vmatprep.mubr.msk.f32.mxu1 %vm4593_vm3, %v4584_v2  ;;  %2378 = vmatprep.mubr.f32.mxu0 %v4584_v2 }
 0x6e7   :  { %4154 = vmatprep.subr.bf16.mxu0 %v4688_v14  ;;  %4157 = vmatprep.subr.bf16.mxu1 %v4587_v18 }
 0x6e8   :  { %3951 = vmatmul.mubr.msk.f32.vlgmr.msra.gmra.mrb[30].mxu1 %vm135_vm0, %v4849_v56  ;;  %3743 = vmatmul.mubr.msk.f32.vlgmr.msra.gmra.mrb[14].mxu0 %vm135_vm0, %v4849_v56 }
 0x6e9   :  { %4156 = vmatpush1.bf16.msra.mxu0 %v4691_v15  ;;  %4159 = vmatpush3.bf16.msra.mxu1 %v4720_v34 }
 0x6ea   :  { %2522 = vmatprep.mubr.f32.mxu0 %v4584_v2  ;;  %3957 = vmatprep.mubr.msk.f32.mxu1 %vm4593_vm3, %v4584_v2 }
 0x6eb   :  { %4161 = vmatprep.subr.bf16.mxu0 %v4160_v11  ;;  %4201 = vmatprep.subr.bf16.mxu1 %v4200_v22  ;;  %v2705_v11 = vld [vmem:[#allocation4 + $0x178] sm:$0xff]  ;;  %v2711_v22 = vld [vmem:[#allocation4 + $0x1a8] sm:$0xff] }
 0x6ec   :  { %v4218_v13 = vpack.c.bf16 %v2705_v11, %v2700_v9  ;;  %v2753_v9 = vld [vmem:[#allocation4 + $0x2f8] sm:$0xff]  ;;  %v2751_v11 = vld [vmem:[#allocation4 + $0x2e8] sm:$0xff] }
 0x7b7   :  { %v2215_v10 = vpop.f32.mrb[12].mxu0  ;;  %v2286_v29 = vpop.f32.mrb[28].mxu1 }
 0x7b8   :  { %v2216_v14 = vadd.f32 %v4767_v47, %v2215_v10  ;;  %v2217_v53 = vpop.f32.mrb[13].mxu0  ;;  %v3945_v54 = vpop.f32.mrb[29].mxu1  ;;  %v2287_v38 = vadd.f32 %v4773_v3, %v2286_v29  ;;  %v2685_v10 = vld [vmem:[#allocation4 + $0xd8] sm:$0xff]  ;;  %v4208_v29 = vpack.c.bf16 %v2686_v51, %v2681_v49  ;;  %v2728_v51 = vld [vmem:[#allocation4 + $0x230] sm:$0xff] }
 0x7b9   :  { %v2218_v24 = vadd.f32 %v4769_v48, %v2217_v53  ;;  %v2689_v53 = vld [vmem:[#allocation4 + $0xf8] sm:$0xff]  ;;  %v2694_v54 = vld [vmem:[#allocation4 + $0x120] sm:$0xff] }
 0x7ba   :  { %v3741_v55 = vmul.f32 -1.442695, %v2216_v14  ;;  %v2729_v49 = vld [vmem:[#allocation4 + $0x238] sm:$0xff] }
 0x7bb   :  { %v4917_v57 = vpop.f32.mrb[30].mxu1  ;;  %v3742_v56 = vmul.f32 -1.442695, %v2218_v24  ;;  %v2688_v24 = vld [vmem:[#allocation4 + $0xf0] sm:$0xff] }
 0x7bc   :  { %4448 = vpow2.f32 %v3741_v55  ;;  %v3952_v15 = vpop.f32.mrb[31].mxu1  ;;  %v4172_v55 = vpack.c.bf16 %v2694_v54, %v2689_v53 }
 0x7bd   :  { %4450 = vpow2.f32 %v3742_v56  ;;  %v2693_v15 = vld [vmem:[#allocation4 + $0x118] sm:$0xff]  ;;  %v2691_v56 = vld [vmem:[#allocation4 + $0x108] sm:$0xff] }
 0x7c6   :  { %v4449_v34 = vpop.eup %4448 }
 0x7c7   :  { %v2294_v58 = vadd.f32 1.0, %v4449_v34  ;;  %v4451_v42 = vpop.eup %4450  ;;  %v4174_v34 = vpack.c.bf16 %v2693_v15, %v2688_v24  ;;  %v2735_v24 = vld [vmem:[#allocation4 + $0x268] sm:$0xff] }
 0x7c8   :  { %v2301_v59 = vadd.f32 1.0, %v4451_v42  ;;  %v2690_v42 = vld [vmem:[#allocation4 + $0x100] sm:$0xff]  ;;  %v2739_v15 = vld [vmem:[#allocation4 + $0x288] sm:$0xff] }
 0x7c9   :  { %4452 = vrcp.f32 %v2294_v58  ;;  %v2696_v58 = vld [vmem:[#allocation4 + $0x130] sm:$0xff] }
 0x7ca   :  { %4454 = vrcp.f32 %v2301_v59  ;;  %v2695_v59 = vld [vmem:[#allocation4 + $0x128] sm:$0xff] }
 0x7d3   :  { %v4453_v60 = vpop.eup %4452 }
 0x7d4   :  { %v2304_v61 = vmul.f32 %v4453_v60, %v2287_v38  ;;  %v4455_v63 = vpop.eup %4454  ;;  %v4212_v38 = vpack.c.bf16 %v2696_v58, %v2691_v56  ;;  %v4214_v60 = vpack.c.bf16 %v2695_v59, %v2690_v42  ;;  %v2738_v58 = vld [vmem:[#allocation4 + $0x280] sm:$0xff]  ;;  %v2743_v42 = vld [vmem:[#allocation4 + $0x2a8] sm:$0xff] }
 0x7d5   :  { %v2307_v0 = vsub.f32 1.0, %v4455_v63  ;;  %v2309_v5 = vmul.f32 %v4455_v63, %v2001_v52  ;;  %v2680_v52 = vld [vmem:[#allocation4 + $0xb0] sm:$0xff] }
 0x7d6   :  { %v2305_v62 = vadd.f32 %v2304_v61, %v2142_v28  ;;  %v2673_v28 = vld [vmem:[#allocation4 + $0x78] sm:$0xff]  ;;  %v4210_v14 = vpack.c.bf16 %v2685_v10, %v2680_v52  ;;  %v2699_v61 = vld [vmem:[#allocation4 + $0x148] sm:$0xff] }
 0x7d7   :  { %v4166_v31 = vpack.c.bf16 %v2673_v28, %v2668_v41  ;;  %v4220_v41 = vpack.c.bf16 %v2716_v26, %v2711_v22  ;;  %v2733_v10 = vld [vmem:[#allocation4 + $0x258] sm:$0xff] }
 0x7d8   :  { %4456 = vtanh.f32 %v2305_v62  ;;  %v2704_v62 = vld [vmem:[#allocation4 + $0x170] sm:$0xff]  ;;  %v4190_v53 = vpack.c.bf16 %v2733_v10, %v2728_v51 }
 0x7d9   :  { %v4176_v63 = vpack.c.bf16 %v2704_v62, %v2699_v61  ;;  %v2740_v61 = vld [vmem:[#allocation4 + $0x290] sm:$0xff]  ;;  %v4194_v62 = vpack.c.bf16 %v2743_v42, %v2738_v58 }
 0x7e2   :  { %v4457_v1 = vpop.eup %4456 }
 0x7e3   :  { %v2308_v4 = vmul.f32 %v4457_v1, %v2307_v0  ;;  %v2698_v0 = vld [vmem:[#allocation4 + $0x140] sm:$0xff]  ;;  %v2703_v1 = vld [vmem:[#allocation4 + $0x168] sm:$0xff] }
 0x7e5   :  { %v4920_v7 = vadd.f32 %v2309_v5, %v2308_v4  ;;  %v2701_v4 = vld [vmem:[#allocation4 + $0x158] sm:$0xff]  ;;  %v4178_v5 = vpack.c.bf16 %v2703_v1, %v2698_v0 }
 0x7e6   :  { %v4216_v12 = vpack.c.bf16 %v2706_v8, %v2701_v4  ;;  %v2745_v0 = vld [vmem:[#allocation4 + $0x2b8] sm:$0xff]  ;;  %v2754_v4 = vld [vmem:[#allocation4 + $0x300] sm:$0xff]  ;;  %v2748_v8 = vld [vmem:[#allocation4 + $0x2d0] sm:$0xff] }
 0x7e7   :  { %3745 = vmatmul.mubr.msk.f32.vlgmr.msra.gmra.mrb[14].mxu0 %vm135_vm0, %v4920_v7  ;;  %3958 = vmatmul.mubr.msk.f32.vlgmr.msra.gmra.mrb[32].mxu1 %vm135_vm0, %v4920_v7  ;;  %v2749_v1 = vld [vmem:[#allocation4 + $0x2d8] sm:$0xff] }
 0x7e8   :  { %4163 = vmatpush1.bf16.msra.mxu0 %v4162_v17  ;;  %4203 = vmatpush1.bf16.msra.mxu1 %v4202_v25  ;;  %v2714_v17 = vld [vmem:[#allocation4 + $0x1c0] sm:$0xff]  ;;  %v4182_v25 = vpack.c.bf16 %v2713_v21, %v2708_v20  ;;  %v4198_v20 = vpack.c.bf16 %v2753_v9, %v2748_v8  ;;  %v2707_v8 = vld [vmem:[#allocation4 + $0x188] sm:$0xff] }
 0x7e9   :  { %4165 = vmatprep.subr.bf16.mxu0 %v4164_v44  ;;  %4205 = vmatprep.subr.bf16.mxu1 %v4204_v36  ;;  %v4180_v19 = vpack.c.bf16 %v2714_v17, %v2709_v16  ;;  %v2715_v44 = vld [vmem:[#allocation4 + $0x1c8] sm:$0xff]  ;;  %v2721_v36 = vld [vmem:[#allocation4 + $0x1f8] sm:$0xff]  ;;  %v2750_v17 = vld [vmem:[#allocation4 + $0x2e0] sm:$0xff] }
 0x7ea   :  { %v4222_v28 = vpack.c.bf16 %v2715_v44, %v2710_v27  ;;  %v4224_v45 = vpack.c.bf16 %v2726_v39, %v2721_v36  ;;  %v2625_v36 = vpop.permute.xlu0 %2624 }
 0x7ec   :  { %4167 = vmatpush1.bf16.msra.mxu0 %v4166_v31  ;;  %4207 = vmatpush1.bf16.msra.mxu1 %v4206_v37  ;;  %v2724_v31 = vld [vmem:[#allocation4 + $0x210] sm:$0xff]  ;;  %v4186_v37 = vpack.c.bf16 %v2723_v6, %v2718_v35 }
 0x7ed   :  { %4169 = vmatprep.subr.bf16.mxu0 %v4168_v43  ;;  %4209 = vmatprep.subr.bf16.mxu1 %v4208_v29  ;;  %v4184_v33 = vpack.c.bf16 %v2724_v31, %v2719_v30  ;;  %v2725_v43 = vld [vmem:[#allocation4 + $0x218] sm:$0xff]  ;;  %v2731_v29 = vld [vmem:[#allocation4 + $0x248] sm:$0xff] }
 0x7ee   :  { %v4226_v46 = vpack.c.bf16 %v2725_v43, %v2720_v40 }
 0x7f0   :  { %4171 = vmatpush1.bf16.msra.mxu0 %v4170_v50  ;;  %4211 = vmatpush1.bf16.msra.mxu1 %v4210_v14  ;;  %v2734_v50 = vld [vmem:[#allocation4 + $0x260] sm:$0xff]  ;;  %v2736_v14 = vld [vmem:[#allocation4 + $0x270] sm:$0xff] }
 0x7f1   :  { %4173 = vmatprep.subr.bf16.mxu0 %v4172_v55  ;;  %4213 = vmatprep.subr.bf16.mxu1 %v4212_v38  ;;  %v4188_v52 = vpack.c.bf16 %v2734_v50, %v2729_v49  ;;  %v4228_v54 = vpack.c.bf16 %v2736_v14, %v2731_v29  ;;  %v2730_v55 = vld [vmem:[#allocation4 + $0x240] sm:$0xff]  ;;  %v2741_v38 = vld [vmem:[#allocation4 + $0x298] sm:$0xff]  ;;  %v2645_v49 = vsel %vm135_vm0, %v4709_v32, %v2625_v36 }
 0x7f2   :  { %v4230_v56 = vpack.c.bf16 %v2735_v24, %v2730_v55 }
 0x7f4   :  { %4175 = vmatpush1.bf16.msra.mxu0 %v4174_v34  ;;  %4215 = vmatpush1.bf16.msra.mxu1 %v4214_v60  ;;  %v2744_v34 = vld [vmem:[#allocation4 + $0x2b0] sm:$0xff]  ;;  %v2746_v60 = vld [vmem:[#allocation4 + $0x2c0] sm:$0xff] }
 0x7f5   :  { %4177 = vmatprep.subr.bf16.mxu0 %v4176_v63  ;;  %4217 = vmatprep.subr.bf16.mxu1 %v4216_v12  ;;  %v4192_v59 = vpack.c.bf16 %v2744_v34, %v2739_v15  ;;  %v4232_v63 = vpack.c.bf16 %v2746_v60, %v2741_v38  ;;  %v4234_v12 = vpack.c.bf16 %v2745_v0, %v2740_v61  ;;  %v2677_v38 = vld [vmem:[#allocation4 + $0x98] sm:$0xff]  ;;  %v2682_v61 = vld [vmem:[#allocation4 + $0xc0] sm:$0xff]  ;;  %v2692_v0 = vld [vmem:[#allocation4 + $0x110] sm:$0xff] }
 0x7f8   :  { %4179 = vmatpush1.bf16.msra.mxu0 %v4178_v5  ;;  %4219 = vmatpush1.bf16.msra.mxu1 %v4218_v13  ;;  %v4196_v5 = vpack.c.bf16 %v2754_v4, %v2749_v1  ;;  %v2756_v13 = vld [vmem:[#allocation4 + $0x310] sm:$0xff]  ;;  %v2697_v1 = vld [vmem:[#allocation4 + $0x138] sm:$0xff] }
 0x7f9   :  { %4181 = vmatprep.subr.bf16.mxu0 %v4180_v19  ;;  %4221 = vmatprep.subr.bf16.mxu1 %v4220_v41  ;;  %v4236_v16 = vpack.c.bf16 %v2756_v13, %v2751_v11  ;;  %v2755_v19 = vld [vmem:[#allocation4 + $0x308] sm:$0xff]  ;;  %v4250_v4 = vpack.c.bf16 %v2697_v1, %v2692_v0  ;;  %v2712_v11 = vld [vmem:[#allocation4 + $0x1b0] sm:$0xff]  ;;  %v3004_v1 = vld [vmem:[#allocation6 + $0x18] sm:$0xff] }
 0x7fa   :  { %v4238_v21 = vpack.c.bf16 %v2755_v19, %v2750_v17  ;;  %v2727_v17 = vld [vmem:[#allocation4 + $0x228] sm:$0xff] }
 0x7fc   :  { %4183 = vmatpush1.bf16.msra.mxu0 %v4182_v25  ;;  %4223 = vmatpush1.bf16.msra.mxu1 %v4222_v28 }
 0x7fd   :  { %4185 = vmatprep.subr.bf16.mxu0 %v4184_v33  ;;  %4225 = vmatprep.subr.bf16.mxu1 %v4224_v45  ;;  %v2631_v45 = vpop.permute.xlu0 %2630 }
 0x800   :  { %4187 = vmatpush1.bf16.msra.mxu0 %v4186_v37  ;;  %4227 = vmatpush1.bf16.msra.mxu1 %v4226_v46 }
 0x801   :  { %4189 = vmatprep.subr.bf16.mxu0 %v4188_v52  ;;  %4229 = vmatprep.subr.bf16.mxu1 %v4228_v54  ;;  %v2637_v50 = vpop.permute.xlu0 %2636  ;;  %v2667_v54 = vld [vmem:[#allocation4 + $0x48] sm:$0xff] }
 0x804   :  { %4191 = vmatpush1.bf16.msra.mxu0 %v4190_v53  ;;  %4231 = vmatpush1.bf16.msra.mxu1 %v4230_v56  ;;  %v2662_v53 = vld [vmem:[#allocation4 + $0x20] sm:$0xff] }
 0x805   :  { %4193 = vmatprep.subr.bf16.mxu0 %v4192_v59  ;;  %4233 = vmatprep.subr.bf16.mxu1 %v4232_v63  ;;  %v2640_v55 = vpop.permute.xlu0 %2639  ;;  %v4241_v34 = vpack.c.bf16 %v2667_v54, %v2662_v53  ;;  %v2672_v59 = vld [vmem:[#allocation4 + $0x70] sm:$0xff] }
 0x808   :  { %4195 = vmatpush1.bf16.msra.mxu0 %v4194_v62  ;;  %4235 = vmatpush1.bf16.msra.mxu1 %v4234_v12  ;;  %v2687_v62 = vld [vmem:[#allocation4 + $0xe8] sm:$0xff]  ;;  %v2717_v12 = vld [vmem:[#allocation4 + $0x1d8] sm:$0xff] }
 0x809   :  { %4197 = vmatprep.subr.bf16.mxu0 %v4196_v5  ;;  %4237 = vmatprep.subr.bf16.mxu1 %v4236_v16  ;;  %v4247_v63 = vpack.c.bf16 %v2687_v62, %v2682_v61  ;;  %v2702_v5 = vld [vmem:[#allocation4 + $0x160] sm:$0xff]  ;;  %v4256_v13 = vpack.c.bf16 %v2717_v12, %v2712_v11  ;;  %v3020_v11 = vld [vmem:[#allocation6 + $0x98] sm:$0xff] }
 0x80a   :  { %v4253_v9 = vpack.c.bf16 %v2707_v8, %v2702_v5  ;;  %v2722_v16 = vld [vmem:[#allocation4 + $0x200] sm:$0xff]  ;;  %v3028_v12 = vld [vmem:[#allocation6 + $0xd8] sm:$0xff] }
 0x80b   :  { %v4259_v19 = vpack.c.bf16 %v2727_v17, %v2722_v16  ;;  %v3006_v16 = vld [vmem:[#allocation6 + $0x28] sm:$0xff] }
 0x80c   :  { %4199 = vmatpush1.bf16.msra.mxu0 %v4198_v20  ;;  %4239 = vmatpush1.bf16.msra.mxu1 %v4238_v21  ;;  %v2732_v20 = vld [vmem:[#allocation4 + $0x250] sm:$0xff]  ;;  %v2737_v21 = vld [vmem:[#allocation4 + $0x278] sm:$0xff]  ;;  %v3014_v17 = vld [vmem:[#allocation6 + $0x68] sm:$0xff] }
 0x80d   :  { %4240 = vmatprep.subr.bf16.mxu0 %v4587_v18  ;;  %4270 = vmatprep.subr.bf16.mxu1 %v4587_v18 }
 0x8ba   :  { %v2524_v22 = vpop.f32.mrb[14].mxu0  ;;  %v2595_v25 = vpop.f32.mrb[32].mxu1 }
 0x8bb   :  { %v2525_v26 = vadd.f32 %v4767_v47, %v2524_v22  ;;  %v2526_v27 = vpop.f32.mrb[15].mxu0  ;;  %v3959_v44 = vpop.f32.mrb[33].mxu1  ;;  %v2596_v37 = vadd.f32 %v4773_v3, %v2595_v25  ;;  %v4262_v22 = vpack.c.bf16 %v2737_v21, %v2732_v20  ;;  %v2742_v25 = vld [vmem:[#allocation4 + $0x2a0] sm:$0xff] }
 0x8bc   :  { %v2527_v28 = vadd.f32 %v4769_v48, %v2526_v27  ;;  %v2628_v47 = vpop.permute.xlu1 %2627  ;;  %v2752_v44 = vld [vmem:[#allocation4 + $0x2f0] sm:$0xff] }
 0x8bd   :  { %v3747_v41 = vmul.f32 -1.442695, %v2525_v26  ;;  %v2647_v52 = vsel %vm2646_vm10, %v2645_v49, %v2628_v47  ;;  %v2747_v26 = vld [vmem:[#allocation4 + $0x2c8] sm:$0xff] }
 0x8be   :  { %v3748_v30 = vmul.f32 -1.442695, %v2527_v28  ;;  %v2649_v29 = vsel %vm2648_vm11, %v2647_v52, %v2631_v45  ;;  %v4265_v27 = vpack.c.bf16 %v2747_v26, %v2742_v25  ;;  %v3005_v25 = vld [vmem:[#allocation6 + $0x20] sm:$0xff] }
 0x8bf   :  { %4458 = vpow2.f32 %v3747_v41  ;;  %v2757_v41 = vld [vmem:[#allocation4 + $0x318] sm:$0xff]  ;;  %v3013_v26 = vld [vmem:[#allocation6 + $0x60] sm:$0xff] }
 0x8c0   :  { %4460 = vpow2.f32 %v3748_v30  ;;  %v2634_v48 = vpop.permute.xlu1 %2633  ;;  %v4268_v28 = vpack.c.bf16 %v2757_v41, %v2752_v44  ;;  %v3001_v30 = vld [vmem:[#allocation6] sm:$0xff] }
 0x8c1   :  { %v2651_v24 = vsel %vm2650_vm12, %v2649_v29, %v2634_v48 }
 0x8c2   :  { %v2653_v56 = vsel %vm2652_vm13, %v2651_v24, %v2637_v50  ;;  %v3002_v50 = vld [vmem:[#allocation6 + $0x8] sm:$0xff] }
 0x8c3   :  { %v2655_v58 = vsel %vm2654_vm14, %v2653_v56, %v2640_v55 }
 0x8c4   :  { %v2621_v51 = vpop.permute.xlu1 %2620 }
 0x8c8   :  { %v2643_v32 = vpop.permute.xlu1 %2642 }
 0x8c9   :  { %v4459_v31 = vpop.eup %4458  ;;  %v2657_v60 = vsel %vm2656_vm15, %v2655_v58, %v2643_v32  ;;  %v3011_v58 = vld [vmem:[#allocation6 + $0x50] sm:$0xff] }
 0x8ca   :  { %v2603_v33 = vadd.f32 1.0, %v4459_v31  ;;  %v4461_v35 = vpop.eup %4460  ;;  %v3009_v31 = vld [vmem:[#allocation6 + $0x40] sm:$0xff] }
 0x8cb   :  { %v2610_v6 = vadd.f32 1.0, %v4461_v35  ;;  %v3017_v35 = vld [vmem:[#allocation6 + $0x80] sm:$0xff] }
 0x8cc   :  { %4462 = vrcp.f32 %v2603_v33  ;;  %v4271_v33 = vpack.c.bf16 %v3009_v31, %v3001_v30 }
 0x8cd   :  { %4464 = vrcp.f32 %v2610_v6  ;;  %v3025_v6 = vld [vmem:[#allocation6 + $0xc0] sm:$0xff] }
 0x8ce   :  { %v4274_v36 = vpack.c.bf16 %v3025_v6, %v3017_v35  ;;  %v3029_v35 = vld [vmem:[#allocation6 + $0xe0] sm:$0xff] }
 0x8d6   :  { %v4463_v39 = vpop.eup %4462 }
 0x8d7   :  { %v2613_v40 = vmul.f32 %v4463_v39, %v2596_v37  ;;  %v4465_v46 = vpop.eup %4464  ;;  %v4957_v37 = vshrl.u32 %v78_v23, 7 }
 0x8d8   :  { %v2616_v3 = vsub.f32 1.0, %v4465_v46 }
 0x8d9   :  { %v2614_v43 = vadd.f32 %v2613_v40, %v4917_v57  ;;  %v2618_v57 = vmul.f32 %v4465_v46, %v4920_v7  ;;  %v4244_v7 = vpack.c.bf16 %v2677_v38, %v2672_v59  ;;  %v2975_v39 = vsub.s32 0, %v4957_v37  ;;  %v4960_v40 = vld [vmem:[#allocation7] sm:$0xff]  ;;  %v3019_v59 = vld [vmem:[#allocation6 + $0x90] sm:$0xff] }
 0x8da   :  { %v3036_v54 = vsub.s32 5, %v4957_v37  ;;  %v3027_v38 = vld [vmem:[#allocation6 + $0xd0] sm:$0xff]  ;;  %v3193_v20 = vsub.s32 7, %v4957_v37 }
 0x8db   :  { %4466 = vtanh.f32 %v2614_v43  ;;  %v2976_v47 = vrot.slane %v4960_v40, %v2975_v39 }
 0x8dc   :  { %v3037_v55 = vrot.slane %v4960_v40, %v3036_v54  ;;  %v3194_v21 = vrot.slane %v4960_v40, %v3193_v20  ;;  %v3008_v54 = vld [vmem:[#allocation6 + $0x38] sm:$0xff] }
 0x8e5   :  { %v4467_v10 = vpop.eup %4466 }
 0x8e6   :  { %v2617_v14 = vmul.f32 %v4467_v10, %v2616_v3 }
 0x8e8   :  { %v2619_v15 = vadd.f32 %v2618_v57, %v2617_v14  ;;  %v3018_v14 = vld [vmem:[#allocation6 + $0x88] sm:$0xff] }
 0x8e9   :  { %v3026_v57 = vld [vmem:[#allocation6 + $0xc8] sm:$0xff] }
 0x8ea   :  { %v2623_v42 = vsel %vm135_vm0, %v2619_v15, %v2621_v51  ;;  %v3010_v51 = vld [vmem:[#allocation6 + $0x48] sm:$0xff]  ;;  %v4280_v53 = vpack.c.bf16 %v3026_v57, %v3018_v14 }
 0x8eb   :  { %3749 = vmatprep.mubr.msk.f32.mxu0 %vm2646_vm10, %v2623_v42  ;;  %3750 = vmatprep.mubr.msk.f32.mxu1 %vm2646_vm10, %v2623_v42  ;;  %v4277_v52 = vpack.c.bf16 %v3010_v51, %v3002_v50  ;;  %v3007_v51 = vld [vmem:[#allocation6 + $0x30] sm:$0xff]  ;;  %v76_v14 = vld [vmem:[#allocation7 + $0x8] sm:$0x1f] }
 0x8ec   :  { %2826 = vmatmul.mubr.f32.vlgmr.msra.gmra.mrb[16].mxu0 %v2657_v60  ;;  %2897 = vmatmul.mubr.f32.vlgmr.msra.gmra.mrb[34].mxu1 %v2657_v60  ;;  %v3272_v57 = vrot.slane %v76_v14, %v2975_v39 }
 0x8ed   :  { %4242 = vmatpush1.bf16.msra.mxu0 %v4241_v34  ;;  %3751 = vmatprep.mubr.msk.f32.mxu0 %vm2646_vm10, %v2623_v42  ;;  %v3003_v34 = vld [vmem:[#allocation6 + $0x10] sm:$0xff] }
 0x8ee   :  { %4243 = vmatprep.subr.bf16.mxu0 %v4587_v18  ;;  %3968 = vmatprep.mubr.msk.f32.mxu1 %vm4593_vm3, %v4584_v2  ;;  %v4283_v42 = vpack.c.bf16 %v3011_v58, %v3003_v34 }
 0x8ef   :  { %4272 = vmatpush3.bf16.msra.mxu1 %v4271_v33  ;;  %v3021_v33 = vld [vmem:[#allocation6 + $0xa0] sm:$0xff] }
 0x8f0   :  { %4273 = vmatprep.subr.bf16.mxu1 %v4587_v18  ;;  %v4298_v6 = vpack.c.bf16 %v3029_v35, %v3021_v33 }
 0x8f1   :  { %4245 = vmatpush1.bf16.msra.mxu0 %v4244_v7  ;;  %v3114_v7 = vsub.s32 6, %v4957_v37 }
 0x8f2   :  { %4246 = vmatprep.subr.bf16.mxu0 %v4587_v18 }
 0x8f3   :  { %4275 = vmatpush3.bf16.msra.mxu1 %v4274_v36  ;;  %v3115_v61 = vrot.slane %v4960_v40, %v3114_v7 }
 0x8f4   :  { %4276 = vmatprep.subr.bf16.mxu1 %v4587_v18 }
 0x8f5   :  { %4248 = vmatpush1.bf16.msra.mxu0 %v4247_v63 }
 0x8f6   :  { %4249 = vmatprep.subr.bf16.mxu0 %v4587_v18 }
 0x8f9   :  { %4251 = vmatpush1.bf16.msra.mxu0 %v4250_v4  ;;  %v3012_v4 = vld [vmem:[#allocation6 + $0x58] sm:$0xff] }
 0x8fa   :  { %4252 = vmatprep.subr.bf16.mxu0 %v4587_v18  ;;  %v4289_v8 = vpack.c.bf16 %v3012_v4, %v3004_v1  ;;  %v2987_v1 = vsub.s32 2, %v4957_v37 }
 0x8fc   :  { %v2988_v4 = vrot.slane %v4960_v40, %v2987_v1 }
 0x8fd   :  { %4254 = vmatpush1.bf16.msra.mxu0 %v4253_v9 }
 0x8fe   :  { %4255 = vmatprep.subr.bf16.mxu0 %v4587_v18 }
 0x901   :  { %4257 = vmatpush1.bf16.msra.mxu0 %v4256_v13  ;;  %v4292_v13 = vpack.c.bf16 %v3028_v12, %v3020_v11  ;;  %v3650_v12 = vrot.slane %v76_v14, %v2987_v1 }
 0x902   :  { %4258 = vmatprep.subr.bf16.mxu0 %v4587_v18 }
 0x905   :  { %4260 = vmatpush1.bf16.msra.mxu0 %v4259_v19  ;;  %v4301_v19 = vpack.c.bf16 %v3014_v17, %v3006_v16 }
 0x906   :  { %4261 = vmatprep.subr.bf16.mxu0 %v4587_v18 }
 0x909   :  { %4263 = vmatpush1.bf16.msra.mxu0 %v4262_v22  ;;  %v2981_v22 = vsub.s32 1, %v4957_v37 }
 0x90a   :  { %4264 = vmatprep.subr.bf16.mxu0 %v4587_v18 }
 0x90b   :  { %v2982_v30 = vrot.slane %v4960_v40, %v2981_v22 }
 0x90d   :  { %4266 = vmatpush1.bf16.msra.mxu0 %v4265_v27 }
 0x90e   :  { %4267 = vmatprep.subr.bf16.mxu0 %v4587_v18 }
 0x911   :  { %4269 = vmatpush1.bf16.msra.mxu0 %v4268_v28  ;;  %v4295_v28 = vpack.c.bf16 %v3013_v26, %v3005_v25 }
 0x912   :  { %4300 = vmatprep.subr.bf16.mxu0 %v4587_v18 }
 0x914   :  { %2968 = vmatmul.mubr.f32.vlgmr.msra.gmra.mrb[18].mxu0 %v2657_v60  ;;  %v4286_v60 = vpack.c.bf16 %v3027_v38, %v3019_v59  ;;  %v3032_v59 = vld [vmem:[#allocation6 + $0xf8] sm:$0xff]  ;;  %v3350_v38 = vrot.slane %v76_v14, %v2981_v22 }
 0x915   :  { %4023 = vmatprep.mubr.msk.f32.mxu0 %vm4593_vm3, %v4584_v2  ;;  %4302 = vmatpush3.bf16.msra.mxu0 %v4301_v19 }
 0x916   :  { %4303 = vmatprep.subr.bf16.mxu0 %v4587_v18 }
 0x9bf   :  { %v2827_v43 = vpop.f32.mrb[16].mxu0  ;;  %v4965_v45 = vpop.f32.mrb[34].mxu1 }
 0x9c0   :  { %v2977_v48 = vadd.f32 %v2976_v47, %v2827_v43  ;;  %v4967_v46 = vpop.f32.mrb[17].mxu0  ;;  %v4969_v49 = vpop.f32.mrb[35].mxu1  ;;  %v3022_v43 = vld [vmem:[#allocation6 + $0xa8] sm:$0xff] }
 0x9c1   :  { %v2983_v36 = vadd.f32 %v2982_v30, %v4967_v46 }
 0x9c2   :  { %v2978_v23 = vmax.f32 %v2977_v48, 0.0  ;;  %v3030_v48 = vld [vmem:[#allocation6 + $0xe8] sm:$0xff] }
 0x9c3   :  { %v2984_v47 = vmax.f32 %v2983_v36, 0.0  ;;  %v4304_v50 = vpack.c.bf16 %v3030_v48, %v3022_v43 }
 0x9c4   :  { %v3033_v3 = vmax.f32 %v2978_v23, 0.0 }
 0x9c5   :  { %4305 = vmatpush3.bf16.msra.mxu0 %v4304_v50 }
 0x9c6   :  { %3969 = vmatmul.mubr.msk.f32.vlgmr.msra.gmra.mrb[36].mxu1 %vm2646_vm10, %v3033_v3  ;;  %4312 = vmatprep.subr.bf16.mxu0 %v4587_v18  ;;  %v3031_v3 = vld [vmem:[#allocation6 + $0xf0] sm:$0xff] }
 0x9c7   :  { %4278 = vmatpush3.bf16.msra.mxu1 %v4277_v52  ;;  %3979 = vmatprep.mubr.msk.f32.mxu1 %vm4593_vm3, %v4584_v2  ;;  %v3023_v52 = vld [vmem:[#allocation6 + $0xb0] sm:$0xff] }
 0x9c8   :  { %4279 = vmatprep.subr.bf16.mxu1 %v4587_v18 }
 0x9cb   :  { %4281 = vmatpush3.bf16.msra.mxu1 %v4280_v53  ;;  %v2992_v53 = vsub.s32 3, %v4957_v37 }
 0x9cc   :  { %4282 = vmatprep.subr.bf16.mxu1 %v4587_v18 }
 0x9cd   :  { %v2993_v34 = vrot.slane %v4960_v40, %v2992_v53  ;;  %v3655_v22 = vrot.slane %v76_v14, %v2992_v53 }
 0x9cf   :  { %v2994_v39 = vadd.f32 %v2993_v34, %v4969_v49  ;;  %v2998_v49 = vsub.s32 4, %v4957_v37 }
 0x9d1   :  { %v3660_v25 = vrot.slane %v76_v14, %v2998_v49 }
 0x9e7   :  { %v4975_v10 = vpop.f32.mrb[18].mxu0 }
 0x9e8   :  { %v2971_v29 = vpop.f32.mrb[19].mxu0 }
 0x9e9   :  { %v4310_v29 = vpack.c.bf16 %v3031_v3, %v3023_v52 }
 0xa99   :  { %v3107_v24 = vpop.f32.mrb[36].mxu1 }
 0xa9a   :  { %v3108_v32 = vadd.f32 %v3107_v24, %v3037_v55  ;;  %v3970_v15 = vpop.f32.mrb[37].mxu1  ;;  %v3016_v55 = vld [vmem:[#allocation6 + $0x78] sm:$0xff] }
 0xa9c   :  { %v3111_v56 = vmax.f32 %v3108_v32, 0.0 }
 0xa9e   :  { %3980 = vmatmul.mubr.msk.f32.vlgmr.msra.gmra.mrb[38].mxu1 %vm2646_vm10, %v3111_v56  ;;  %v4313_v56 = vpack.c.bf16 %v3016_v55, %v3008_v54 }
 0xa9f   :  { %3990 = vmatprep.mubr.msk.f32.mxu1 %vm4593_vm3, %v4584_v2  ;;  %4284 = vmatpush3.bf16.msra.mxu1 %v4283_v42  ;;  %v3024_v42 = vld [vmem:[#allocation6 + $0xb8] sm:$0xff] }
 0xaa0   :  { %4285 = vmatprep.subr.bf16.mxu1 %v4587_v18 }
 0xaa3   :  { %4287 = vmatpush3.bf16.msra.mxu1 %v4286_v60  ;;  %v4316_v60 = vpack.c.bf16 %v3032_v59, %v3024_v42 }
 0xaa4   :  { %4288 = vmatprep.subr.bf16.mxu1 %v4587_v18 }
 0xb71   :  { %v3185_v62 = vpop.f32.mrb[38].mxu1 }
 0xb72   :  { %v3186_v63 = vadd.f32 %v3185_v62, %v3115_v61  ;;  %v3981_v0 = vpop.f32.mrb[39].mxu1 }
 0xb74   :  { %v4987_v5 = vadd.f32 %v3186_v63, %v2978_v23  ;;  %v3015_v23 = vld [vmem:[#allocation6 + $0x70] sm:$0xff]  ;;  %v2995_v63 = vmax.f32 %v2994_v39, 0.0 }
 0xb75   :  { %v4307_v46 = vpack.c.bf16 %v3015_v23, %v3007_v51 }
 0xb76   :  { %v3190_v9 = vmax.f32 %v4987_v5, 0.0 }
 0xb78   :  { %3991 = vmatmul.mubr.msk.f32.vlgmr.msra.gmra.mrb[40].mxu1 %vm2646_vm10, %v3190_v9  ;;  %v2999_v9 = vrot.slane %v4960_v40, %v2998_v49 }
 0xb79   :  { %4290 = vmatpush3.bf16.msra.mxu1 %v4289_v8  ;;  %4001 = vmatprep.mubr.msk.f32.mxu1 %vm4593_vm3, %v4584_v2 }
 0xb7a   :  { %4291 = vmatprep.subr.bf16.mxu1 %v4587_v18  ;;  %v3000_v11 = vadd.f32 %v2999_v9, %v4975_v10 }
 0xb7d   :  { %4293 = vmatpush3.bf16.msra.mxu1 %v4292_v13 }
 0xb7e   :  { %4294 = vmatprep.subr.bf16.mxu1 %v4587_v18 }
 0xc4b   :  { %v3264_v27 = vpop.f32.mrb[40].mxu1 }
 0xc4c   :  { %v3265_v44 = vadd.f32 %v3264_v27, %v3194_v21  ;;  %v3992_v41 = vpop.f32.mrb[41].mxu1 }
 0xc4e   :  { %v3268_v31 = vmax.f32 %v3265_v44, 0.0 }
 0xc50   :  { %4002 = vmatmul.mubr.msk.f32.vlgmr.msra.gmra.mrb[42].mxu1 %vm2646_vm10, %v3268_v31 }
 0xc51   :  { %4296 = vmatpush3.bf16.msra.mxu1 %v4295_v28  ;;  %4012 = vmatprep.mubr.msk.f32.mxu1 %vm4593_vm3, %v4584_v2 }
 0xc52   :  { %4297 = vmatprep.subr.bf16.mxu1 %v4587_v18 }
 0xc55   :  { %4299 = vmatpush3.bf16.msra.mxu1 %v4298_v6 }
 0xc56   :  { %4306 = vmatprep.subr.bf16.mxu1 %v4587_v18 }
 0xc58   :  { %4013 = vmatmul.mubr.msk.f32.vlgmr.msra.gmra.mrb[44].mxu1 %vm2646_vm10, %v2984_v47 }
 0xc59   :  { %4034 = vmatprep.mubr.msk.f32.mxu1 %vm4593_vm3, %v4584_v2  ;;  %4308 = vmatpush3.bf16.msra.mxu1 %v4307_v46 }
 0xc5a   :  { %4309 = vmatprep.subr.bf16.mxu1 %v4587_v18 }
 0xc5d   :  { %4311 = vmatpush3.bf16.msra.mxu1 %v4310_v29 }
 0xd23   :  { %v3342_v24 = vpop.f32.mrb[42].mxu1 }
 0xd24   :  { %v3343_v32 = vadd.f32 %v3342_v24, %v3272_v57  ;;  %v4003_v15 = vpop.f32.mrb[43].mxu1 }
 0xd26   :  { %v3346_v58 = vadd.f32 %v3343_v32, %v4987_v5 }
 0xd28   :  { %4024 = vmatmul.mubr.msk.f32.vlgmr.msra.gmra.mrb[20].mxu0 %vm2646_vm10, %v3346_v58 }
 0xd29   :  { %4314 = vmatpush3.bf16.msra.mxu0 %v4313_v56  ;;  %4045 = vmatprep.mubr.msk.f32.mxu0 %vm4593_vm3, %v4584_v2  ;;  %v2989_v2 = vadd.f32 %v2988_v4, %v4965_v45 }
 0xd2a   :  { %4315 = vmatprep.subr.bf16.mxu0 %v4587_v18 }
 0xd2b   :  { %v3420_v7 = vpop.f32.mrb[44].mxu1 }
 0xd2c   :  { %v3421_v61 = vadd.f32 %v3420_v7, %v3350_v38  ;;  %v4014_v62 = vpop.f32.mrb[45].mxu1 }
 0xd2d   :  { %4317 = vmatpush3.bf16.msra.mxu0 %v4316_v60 }
 0xd2e   :  { %v3424_v0 = vmax.f32 %v3421_v61, 0.0 }
 0xd30   :  { %4035 = vmatmul.mubr.msk.f32.vlgmr.msra.gmra.mrb[46].mxu1 %vm2646_vm10, %v3424_v0  ;;  %4046 = vmatmul.mubr.msk.f32.vlgmr.msra.gmra.mrb[22].mxu0 %vm2646_vm10, %v2995_v63 }
 0xdfb   :  { %v3494_v5 = vpop.f32.mrb[20].mxu0 }
 0xdfc   :  { %v3498_v18 = vadd.f32 %v3494_v5, %v2989_v2  ;;  %v4025_v8 = vpop.f32.mrb[21].mxu0 }
 0xe03   :  { %v3568_v13 = vpop.f32.mrb[46].mxu1  ;;  %v3642_v16 = vpop.f32.mrb[22].mxu0 }
 0xe04   :  { %v3572_v17 = vadd.f32 %v3568_v13, %v3498_v18  ;;  %v3646_v19 = vadd.f32 %v3642_v16, %v3000_v11  ;;  %v4036_v20 = vpop.f32.mrb[47].mxu1  ;;  %v4047_v21 = vpop.f32.mrb[23].mxu0 }
 0xe06   :  { %v3651_v26 = vadd.f32 %v3650_v12, %v3646_v19  ;;  %v3675_v45 = vsel %vm135_vm0, %v3572_v17, -inf  ;;  %v3656_v37 = vmul.f32 %v3655_v22, %v3572_v17 }
 0xe07   :  { %3676 = vmax.xlane.f32.xlu0 %v3675_v45 }
 0xe08   :  { %v3661_v27 = vmul.f32 %v3660_v25, %v3651_v26 }
 0xe0a   :  { %v3662_v44 = vadd.f32 %v3661_v27, %v3656_v37 }
 0xe0c   :  { %v3663_v40 = vsel %vm135_vm0, %v3662_v44, -inf }
 0xe0d   :  { %3664 = vmax.xlane.f32.xlu1 %v3663_v40 }
 0xe94   :  { %v3677_v10 = vpop.xlane.xlu0 %3676 }
 0xe95   :  { %v3678_v41 = vsub.f32 %v3572_v17, %v3677_v10 }
 0xe97   :  { %v3679_v28 = vmul.f32 1.442695, %v3678_v41 }
 0xe99   :  { %4468 = vpow2.f32 %v3679_v28 }
 0xe9a   :  { %v3665_v30 = vpop.xlane.xlu1 %3664 }
 0xe9b   :  { %v3666_v31 = vsub.f32 %v3662_v44, %v3665_v30 }
 0xe9d   :  { %v3667_v33 = vmul.f32 1.442695, %v3666_v31 }
 0xe9f   :  { %4470 = vpow2.f32 %v3667_v33 }
 0xea3   :  { %v4469_v35 = vpop.eup %4468 }
 0xea4   :  { %v3681_v6 = vsel %vm135_vm0, %v4469_v35, 0.0 }
 0xea5   :  { %3682 = vadd.xlane.f32.xlu0 %v3681_v6 }
 0xea9   :  { %v4471_v36 = vpop.eup %4470 }
 0xeaa   :  { %v3669_v47 = vsel %vm135_vm0, %v4471_v36, 0.0 }
 0xeab   :  { %3670 = vadd.xlane.f32.xlu0 %v3669_v47 }
 0xf32   :  { %v3683_v43 = vpop.xlane.xlu0 %3682 }
 0xf33   :  { %4472 = vlog2.f32 %v3683_v43 }
 0xf38   :  { %v3671_v23 = vpop.xlane.xlu0 %3670 }
 0xf39   :  { %4474 = vlog2.f32 %v3671_v23 }
 0xf3d   :  { %v4473_v48 = vpop.eup %4472 }
 0xf3e   :  { %v3685_v50 = vmul.f32 0.6931472, %v4473_v48 }
 0xf40   :  { %v3686_v51 = vsub.f32 %v3678_v41, %v3685_v50 }
 0xf42   :  { %3688 = vrot.lane.b32.xlu1 %v3686_v51, %s4594_s4 }
 0xf43   :  { %v4475_v46 = vpop.eup %4474 }
 0xf44   :  { %v3673_v52 = vmul.f32 0.6931472, %v4475_v46 }
 0xf46   :  { %v3674_v3 = vsub.f32 %v3666_v31, %v3673_v52 }
 0xfb4   :  { %v3689_v29 = vpop.permute.xlu1 %3688 }
 0xfb5   :  { %v3691_v14 = vsel %vm135_vm0, %v3674_v3, %v3689_v29 }
 0xfb6   :  { %3692 = vst.msk [vmem:[%s5044_s5] sm:$0xff] %vm2646_vm10, %v3691_v14 }
 0xfb7   :  { %3697 = vsyncpa [#allocation3], 1 }
 0xfb8   :  { %3698 = vsyncpa [#allocation5], 1 }
 0xfb9   :  { %3699 = vsyncpa [#allocation8], 1 }

</bundles_post_ra>
